<compile_context>
chip_gen: v6e
topology: v6e:2x2x1
jax: 0.10.0
libtpu: 0.0.40
codegen_flags: <defaults>
</compile_context>

<pallas_src>
import functools

import jax
import jax.numpy as jnp
from jax.experimental import pallas as pl
from jax.experimental.pallas import tpu as pltpu


_PAD_UNIT = 256                      # node-dim pad / tile granularity (mult. of 8 and 128)
_VMEM_LIMIT = 32 * 1024 * 1024       # explicit scoped-VMEM budget (safe on v5e/v6e/v7x)


# ----------------------------- kernels ---------------------------------------


def _mlp_feature_kernel(num_hidden, *refs):
    """refs = (x_tile, [w', b'] * num_hidden, w_final, b_final, z_tile_out).

    Weights are bf16 with bias/BN folded in; biases are f32. Matmuls run on the
    MXU with f32 accumulation; bias/ReLU math stays in f32 (v5e has no bf16 VPU).
    """
    x_ref = refs[0]
    out_ref = refs[-1]
    params = refs[1:-1]

    h = x_ref[...]                                        # bf16 [tile_m, in_c]
    idx = 0
    for _ in range(num_hidden):
        w_ref, b_ref = params[idx], params[idx + 1]
        idx += 2
        a = jnp.dot(h, w_ref[...], preferred_element_type=jnp.float32)
        a = a + b_ref[...]                                # folded bias + BN shift (f32)
        h = jnp.maximum(a, 0.0).astype(jnp.bfloat16)      # ReLU, bf16 for next MXU op
    w_ref, b_ref = params[idx], params[idx + 1]
    z = jnp.dot(h, w_ref[...], preferred_element_type=jnp.float32) + b_ref[...]
    out_ref[...] = z.astype(out_ref.dtype)


def _prop_logsoftmax_kernel(prop_ref, z_ref, out_ref, acc_ref):
    """K-blocked  out_tile = log_softmax(prop_row_tile @ z)  with f32 accumulator."""
    # TODO(synk): if prop is a sparse adjacency, replace this dense matmul with a
    # scalar-prefetched gather/segment-sum formulation (PrefetchScalarGridSpec).
    k = pl.program_id(1)

    @pl.when(k == 0)
    def _():
        acc_ref[...] = jnp.zeros_like(acc_ref)

    acc_ref[...] += jnp.dot(prop_ref[...], z_ref[...],
                            preferred_element_type=jnp.float32)

    @pl.when(k == pl.num_programs(1) - 1)
    def _():
        s = acc_ref[...]
        m = jnp.max(s, axis=-1, keepdims=True)
        zs = s - m
        lse = jnp.log(jnp.sum(jnp.exp(zs), axis=-1, keepdims=True))
        out_ref[...] = zs - lse


# --------------------------- tiling helpers -----------------------------------


def _round_up(x, m):
    return ((x + m - 1) // m) * m


def _divisor_tile(n, cap, unit=_PAD_UNIT):
    """Largest multiple of `unit` that divides n and is <= cap (requires n % unit == 0)."""
    cap = max(unit, min(cap, n))
    best = unit
    t = unit
    while t <= cap:
        if n % t == 0:
            best = t
        t += unit
    return best


# ----------------------------- wrappers ---------------------------------------


def _fold_hidden(w, b, scale, shift):
    """Fold Linear bias + eval-mode BN affine into (W', b').  Fold in f32, cast product."""
    w_f = (w * scale).astype(jnp.bfloat16)                # [in, out]
    b_f = (b * scale + shift).astype(jnp.float32)         # [1, out]
    return w_f, b_f


def _mlp_features(x_bf16, folded_params):
    """Kernel 1: z = lins[-1](...relu(bn(lin(x)))...), returned in bf16, padded rows."""
    n_pad, in_c = x_bf16.shape
    out_c = folded_params[-1][0].shape[1]
    num_hidden = len(folded_params) - 1

    # Big row tiles (HBM-bound on x); keep >= 4 grid steps when possible (v7x megacore).
    tile_m = _divisor_tile(n_pad, min(2048, max(_PAD_UNIT, n_pad // 4)))
    grid = (n_pad // tile_m,)

    ins = [x_bf16]
    in_specs = [pl.BlockSpec((tile_m, in_c), lambda i: (i, 0))]
    for w, b in folded_params:
        ins += [w, b]
        # Constant index_map: blocks are fetched once and stay resident in VMEM.
        # TODO(synk): pipeline_mode=pl.Buffered(1) would drop the second buffer for
        # these resident weights; left at the default for compile safety.
        in_specs += [pl.BlockSpec(w.shape, lambda i: (0, 0)),
                     pl.BlockSpec(b.shape, lambda i: (0, 0))]

    flops = 2 * n_pad * sum(int(w.shape[0]) * int(w.shape[1]) for w, _ in folded_params)
    bytes_accessed = (int(x_bf16.size) * 2 + n_pad * out_c * 2 +
                      sum(int(w.size) * 2 + int(b.size) * 4 for w, b in folded_params))

    kernel = functools.partial(_mlp_feature_kernel, num_hidden)
    return pl.pallas_call(
        kernel,
        grid=grid,
        out_shape=jax.ShapeDtypeStruct((n_pad, out_c), jnp.bfloat16),
        in_specs=in_specs,
        out_specs=pl.BlockSpec((tile_m, out_c), lambda i: (i, 0)),
        compiler_params=pltpu.CompilerParams(
            dimension_semantics=("parallel",),
            vmem_limit_bytes=_VMEM_LIMIT),
        cost_estimate=pl.CostEstimate(flops=int(flops), transcendentals=0,
                                      bytes_accessed=int(bytes_accessed)),
    )(*ins)


def _propagate_log_softmax(prop_bf16, z_bf16, k_tile_cap):
    """Kernel 2: out = log_softmax(prop @ z, dim=-1), row- and K-blocked."""
    n_pad, k_pad = prop_bf16.shape
    out_c = z_bf16.shape[1]

    # Row tile <= 1024 (>= 4 steps when possible for megacore); K tile <= k_tile_cap.
    # Worst-case in-flight VMEM: 2x(1024x4096 bf16 prop) + 2x(4096x128-lane bf16 z)
    # + 2x(1024x128-lane f32 out) + f32 acc  ~= 20 MiB, under _VMEM_LIMIT on all gens.
    tile_m = _divisor_tile(n_pad, min(1024, max(_PAD_UNIT, n_pad // 4)))
    tile_k = _divisor_tile(k_pad, k_tile_cap)
    grid = (n_pad // tile_m, k_pad // tile_k)

    flops = 2 * n_pad * k_pad * out_c + 5 * n_pad * out_c
    transcendentals = n_pad * (out_c + 1)                 # exp per logit + log per row
    bytes_accessed = (int(prop_bf16.size) * 2 +
                      int(z_bf16.size) * 2 * grid[0] +    # z re-read per row tile
                      n_pad * out_c * 4)

    return pl.pallas_call(
        _prop_logsoftmax_kernel,
        grid=grid,
        out_shape=jax.ShapeDtypeStruct((n_pad, out_c), jnp.float32),
        in_specs=[pl.BlockSpec((tile_m, tile_k), lambda i, k: (i, k)),   # prop tile
                  pl.BlockSpec((tile_k, out_c), lambda i, k: (k, 0))],   # z K-slice
        out_specs=pl.BlockSpec((tile_m, out_c), lambda i, k: (i, 0)),
        scratch_shapes=[pltpu.VMEM((tile_m, out_c), jnp.float32)],
        compiler_params=pltpu.CompilerParams(
            dimension_semantics=("parallel", "arbitrary"),
            vmem_limit_bytes=_VMEM_LIMIT),
        cost_estimate=pl.CostEstimate(flops=int(flops),
                                      transcendentals=int(transcendentals),
                                      bytes_accessed=int(bytes_accessed)),
    )(prop_bf16, z_bf16)


@functools.partial(jax.jit, static_argnames=("k_tile_cap",))
def mlp_forward(x, prop, hidden_params, final_params, k_tile_cap=4096):
    """hidden_params: list of (w[in,out], b[1,out], bn_scale[1,out], bn_shift[1,out])
       final_params : (w[in,out], b[1,out])
       Returns [N, out_channels] f32 log-probabilities."""
    n = x.shape[0]
    n_pad = _round_up(max(n, 1), _PAD_UNIT)

    folded = [_fold_hidden(w, b, s, sh) for (w, b, s, sh) in hidden_params]
    folded.append((final_params[0].astype(jnp.bfloat16),
                   final_params[1].astype(jnp.float32)))

    # Zero-pad the node dim to a tile multiple (replaces the old tile=n fallback
    # that could request a full (N, N) prop block for awkward N).  Padded prop
    # columns are zero, so padded z rows contribute nothing; padded output rows
    # are sliced off below.
    x_p = jnp.pad(x.astype(jnp.bfloat16), ((0, n_pad - n), (0, 0)))
    prop_p = jnp.pad(prop.astype(jnp.bfloat16), ((0, n_pad - n), (0, n_pad - n)))

    z = _mlp_features(x_p, folded)                            # [n_pad, out_c] bf16
    out_p = _propagate_log_softmax(prop_p, z, k_tile_cap)     # [n_pad, out_c] f32
    return out_p[:n]


# --------------------------- reference & init ---------------------------------


def _reference(x, prop, hidden_params, final_params):
    """Pure-jnp reference with the same bf16 cast points as the kernels."""
    h = x.astype(jnp.bfloat16)
    for (w, b, s, sh) in hidden_params:
        w_f = (w * s).astype(jnp.bfloat16)
        b_f = (b * s + sh).astype(jnp.float32)
        a = jnp.dot(h, w_f, preferred_element_type=jnp.float32) + b_f
        h = jnp.maximum(a, 0.0).astype(jnp.bfloat16)
    z = jnp.dot(h, final_params[0].astype(jnp.bfloat16),
                preferred_element_type=jnp.float32) + final_params[1]
    z = z.astype(jnp.bfloat16)
    s = jnp.dot(prop.astype(jnp.bfloat16), z, preferred_element_type=jnp.float32)
    m = jnp.max(s, axis=-1, keepdims=True)
    zs = s - m
    return zs - jnp.log(jnp.sum(jnp.exp(zs), axis=-1, keepdims=True))


def _init_linear(key, fan_in, fan_out):
    """Mimics torch.nn.Linear default init (uniform ±1/sqrt(fan_in)); W stored [in,out]."""
    kw, kb = jax.random.split(key)
    bound = 1.0 / jnp.sqrt(jnp.float32(fan_in))
    w = jax.random.uniform(kw, (fan_in, fan_out), jnp.float32, -bound, bound)
    b = jax.random.uniform(kb, (1, fan_out), jnp.float32, -bound, bound)
    return w, b


def _init_bn(key, num_features, eps=1e-5):
    """Eval-mode BatchNorm1d params folded to per-channel (scale, shift)."""
    kg, kb, km, kv = jax.random.split(key, 4)
    gamma = 1.0 + 0.1 * jax.random.normal(kg, (1, num_features), jnp.float32)
    beta = 0.1 * jax.random.normal(kb, (1, num_features), jnp.float32)
    running_mean = 0.1 * jax.random.normal(km, (1, num_features), jnp.float32)
    running_var = 1.0 + 0.1 * jax.random.uniform(kv, (1, num_features), jnp.float32)
    scale = gamma / jnp.sqrt(running_var + eps)
    shift = beta - running_mean * scale
    return scale, shift


def _run_case(key, n, in_c, hid, out_c, num_layers, k_tile_cap):
    keys = jax.random.split(key, 2 + 2 * (num_layers - 1) + 1)

    x = jax.random.normal(keys[0], (n, in_c), jnp.float32)
    prop = jax.random.uniform(keys[1], (n, n), jnp.float32)
    prop = prop / jnp.sum(prop, axis=-1, keepdims=True)   # row-normalized propagation

    hidden_params = []
    kidx = 2
    fan_in = in_c
    for _ in range(num_layers - 1):
        w, b = _init_linear(keys[kidx], fan_in, hid); kidx += 1
        s, sh = _init_bn(keys[kidx], hid); kidx += 1
        hidden_params.append((w, b, s, sh))
        fan_in = hid
    final_params = _init_linear(keys[kidx], fan_in, out_c)

    out = jax.block_until_ready(
        mlp_forward(x, prop, hidden_params, final_params, k_tile_cap=k_tile_cap))
    ref = _reference(x, prop, hidden_params, final_params)

    assert out.shape == (n, out_c)
    assert bool(jnp.all(jnp.isfinite(out)))
    # log_softmax rows must normalize exactly (computed in f32 inside the kernel).
    assert bool(jnp.all(jnp.abs(jnp.sum(jnp.exp(out), axis=-1) - 1.0) < 1e-4))
    # Match the pure-JAX reference (same bf16 cast points, f32 accumulation).
    assert bool(jnp.max(jnp.abs(out - ref)) < 5e-3)


if __name__ == "__main__":
    # Synthetic config mirroring MLP: num_layers=3, batch_norm=True, eval mode.
    IN_C, HID, OUT_C, NUM_LAYERS = 16, 32, 8, 3
    key = jax.random.PRNGKey(0)
    k1, k2 = jax.random.split(key)

    # Case 1: tiny N (exercises the padding path, single-step grids).
    _run_case(k1, n=8, in_c=IN_C, hid=HID, out_c=OUT_C,
              num_layers=NUM_LAYERS, k_tile_cap=4096)

    # Case 2: non-multiple-of-256 N with a small K-tile cap so kernel 2 runs a
    # genuine (rows x K) grid with the f32 accumulator / pl.when init+finalize path.
    _run_case(k2, n=300, in_c=IN_C, hid=HID, out_c=OUT_C,
              num_layers=NUM_LAYERS, k_tile_cap=256)

    print("KERNEL_OK")
</pallas_src>

<mosaic_0001>
module attributes {stable_mosaic.version = 11 : i64} {
  func.func @_prop_logsoftmax_kernel(%arg0: i32, %arg1: i32, %arg2: memref<256x256xbf16, #tpu.memory_space<vmem>>, %arg3: memref<256x8xbf16, #tpu.memory_space<vmem>>, %arg4: memref<256x8xf32, #tpu.memory_space<vmem>>, %arg5: memref<256x8xf32, #tpu.memory_space<vmem>>) attributes {dimension_semantics = [#tpu.dimension_semantics<parallel>, #tpu.dimension_semantics<arbitrary>], iteration_bounds = array<i64: 1, 1>, scalar_prefetch = 0 : i64, scratch_operands = 1 : i64, tpu.core_type = #tpu.core_type<tc>, window_params = [{transform_indices = @transform_0, window_bounds = array<i64: 256, 256>}, {transform_indices = @transform_1, window_bounds = array<i64: 256, 8>}, {transform_indices = @transform_2, window_bounds = array<i64: 256, 8>}]} {
    %c0_i32 = arith.constant 0 : i32
    %0 = arith.cmpi eq, %arg1, %c0_i32 : i32
    %1 = arith.extui %0 : i1 to i32
    %c0_i32_0 = arith.constant 0 : i32
    %2 = arith.cmpi ne, %1, %c0_i32_0 : i32
    scf.if %2 {
      %cst_10 = arith.constant 0.000000e+00 : f32
      %12 = vector.broadcast %cst_10 : f32 to vector<256x8xf32>
      %c0_11 = arith.constant 0 : index
      %c0_12 = arith.constant 0 : index
      %13 = vector.load %arg5[%c0_11, %c0_12] : memref<256x8xf32, #tpu.memory_space<vmem>>, vector<256x8xf32>
      tpu.vector_store %arg5[%c0_11, %c0_12], %12 {strides = array<i32>} : memref<256x8xf32, #tpu.memory_space<vmem>>, vector<256x8xf32>,
    } else {
    }
    %c0 = arith.constant 0 : index
    %c0_1 = arith.constant 0 : index
    %3 = vector.load %arg5[%c0, %c0_1] : memref<256x8xf32, #tpu.memory_space<vmem>>, vector<256x8xf32>
    %c0_2 = arith.constant 0 : index
    %c0_3 = arith.constant 0 : index
    %4 = vector.load %arg2[%c0_2, %c0_3] : memref<256x256xbf16, #tpu.memory_space<vmem>>, vector<256x256xbf16>
    %c0_4 = arith.constant 0 : index
    %c0_5 = arith.constant 0 : index
    %5 = vector.load %arg3[%c0_4, %c0_5] : memref<256x8xbf16, #tpu.memory_space<vmem>>, vector<256x8xbf16>
    %cst = arith.constant dense<0.000000e+00> : vector<256x8xf32>
    %6 = tpu.matmul %4, %5, %cst {dimension_numbers = #tpu.dot_dimension_numbers<[1], [0], [0], [1], [0, 0, 1, 1], [], []>} : vector<256x256xbf16>, vector<256x8xbf16>, vector<256x8xf32> -> vector<256x8xf32>
    %7 = arith.addf %3, %6 : vector<256x8xf32>
    %c0_6 = arith.constant 0 : index
    %c0_7 = arith.constant 0 : index
    %8 = vector.load %arg5[%c0_6, %c0_7] : memref<256x8xf32, #tpu.memory_space<vmem>>, vector<256x8xf32>
    tpu.vector_store %arg5[%c0_6, %c0_7], %7 {strides = array<i32>} : memref<256x8xf32, #tpu.memory_space<vmem>>, vector<256x8xf32>,
    %c0_i32_8 = arith.constant 0 : i32
    %9 = arith.cmpi eq, %arg1, %c0_i32_8 : i32
    %10 = arith.extui %9 : i1 to i32
    %c0_i32_9 = arith.constant 0 : i32
    %11 = arith.cmpi ne, %10, %c0_i32_9 : i32
    scf.if %11 {
      %c0_10 = arith.constant 0 : index
      %c0_11 = arith.constant 0 : index
      %12 = vector.load %arg5[%c0_10, %c0_11] : memref<256x8xf32, #tpu.memory_space<vmem>>, vector<256x8xf32>
      %cst_12 = arith.constant dense<0xFF800000> : vector<256xf32>
      %13 = vector.multi_reduction <maximumf>, %12, %cst_12 [1] : vector<256x8xf32> to vector<256xf32>
      %14 = vector.shape_cast %13 : vector<256xf32> to vector<256x1xf32>
      %15 = vector.broadcast %14 : vector<256x1xf32> to vector<256x8xf32>
      %16 = arith.subf %12, %15 : vector<256x8xf32>
      %17 = math.exp %16 : vector<256x8xf32>
      %cst_13 = arith.constant dense<0.000000e+00> : vector<256xf32>
      %18 = vector.multi_reduction <add>, %17, %cst_13 [1] : vector<256x8xf32> to vector<256xf32>
      %19 = vector.shape_cast %18 : vector<256xf32> to vector<256x1xf32>
      %20 = math.log %19 : vector<256x1xf32>
      %21 = vector.broadcast %20 : vector<256x1xf32> to vector<256x8xf32>
      %22 = arith.subf %16, %21 : vector<256x8xf32>
      %c0_14 = arith.constant 0 : index
      %c0_15 = arith.constant 0 : index
      %23 = vector.load %arg4[%c0_14, %c0_15] : memref<256x8xf32, #tpu.memory_space<vmem>>, vector<256x8xf32>
      tpu.vector_store %arg4[%c0_14, %c0_15], %22 {strides = array<i32>} : memref<256x8xf32, #tpu.memory_space<vmem>>, vector<256x8xf32>,
    } else {
    }
    return
  }
  func.func @transform_0(%arg0: i32, %arg1: i32) -> (i32, i32) {
    %c0_i32 = arith.constant 0 : i32
    return %arg0, %arg1 : i32, i32
  }
  func.func @transform_1(%arg0: i32, %arg1: i32) -> (i32, i32) {
    %c0_i32 = arith.constant 0 : i32
    %c0_i32_0 = arith.constant 0 : i32
    return %arg1, %c0_i32 : i32, i32
  }
  func.func @transform_2(%arg0: i32, %arg1: i32) -> (i32, i32) {
    %c0_i32 = arith.constant 0 : i32
    %c0_i32_0 = arith.constant 0 : i32
    return %arg0, %c0_i32 : i32, i32
  }
}

module attributes {stable_mosaic.version = 11 : i64} {
  func.func @_mlp_feature_kernel(%arg0: i32, %arg1: memref<256x16xbf16, #tpu.memory_space<vmem>>, %arg2: memref<16x32xbf16, #tpu.memory_space<vmem>>, %arg3: memref<1x32xf32, #tpu.memory_space<vmem>>, %arg4: memref<32x32xbf16, #tpu.memory_space<vmem>>, %arg5: memref<1x32xf32, #tpu.memory_space<vmem>>, %arg6: memref<32x8xbf16, #tpu.memory_space<vmem>>, %arg7: memref<1x8xf32, #tpu.memory_space<vmem>>, %arg8: memref<256x8xbf16, #tpu.memory_space<vmem>>) attributes {dimension_semantics = [#tpu.dimension_semantics<parallel>], iteration_bounds = array<i64: 1>, scalar_prefetch = 0 : i64, scratch_operands = 0 : i64, tpu.core_type = #tpu.core_type<tc>, window_params = [{transform_indices = @transform_0, window_bounds = array<i64: 256, 16>}, {pipeline_mode = #tpu.pipeline_mode<synchronous>, transform_indices = @transform_1, window_bounds = array<i64: 16, 32>}, {pipeline_mode = #tpu.pipeline_mode<synchronous>, transform_indices = @transform_2, window_bounds = array<i64: 1, 32>}, {pipeline_mode = #tpu.pipeline_mode<synchronous>, transform_indices = @transform_3, window_bounds = array<i64: 32, 32>}, {pipeline_mode = #tpu.pipeline_mode<synchronous>, transform_indices = @transform_4, window_bounds = array<i64: 1, 32>}, {pipeline_mode = #tpu.pipeline_mode<synchronous>, transform_indices = @transform_5, window_bounds = array<i64: 32, 8>}, {pipeline_mode = #tpu.pipeline_mode<synchronous>, transform_indices = @transform_6, window_bounds = array<i64: 1, 8>}, {transform_indices = @transform_7, window_bounds = array<i64: 256, 8>}]} {
    %c0 = arith.constant 0 : index
    %c0_0 = arith.constant 0 : index
    %0 = vector.load %arg1[%c0, %c0_0] : memref<256x16xbf16, #tpu.memory_space<vmem>>, vector<256x16xbf16>
    %c0_1 = arith.constant 0 : index
    %c0_2 = arith.constant 0 : index
    %1 = vector.load %arg2[%c0_1, %c0_2] : memref<16x32xbf16, #tpu.memory_space<vmem>>, vector<16x32xbf16>
    %cst = arith.constant dense<0.000000e+00> : vector<256x32xf32>
    %2 = tpu.matmul %0, %1, %cst {dimension_numbers = #tpu.dot_dimension_numbers<[1], [0], [0], [1], [0, 0, 1, 1], [], []>} : vector<256x16xbf16>, vector<16x32xbf16>, vector<256x32xf32> -> vector<256x32xf32>
    %c0_3 = arith.constant 0 : index
    %c0_4 = arith.constant 0 : index
    %3 = vector.load %arg3[%c0_3, %c0_4] : memref<1x32xf32, #tpu.memory_space<vmem>>, vector<1x32xf32>
    %4 = vector.broadcast %3 : vector<1x32xf32> to vector<256x32xf32>
    %5 = arith.addf %2, %4 : vector<256x32xf32>
    %cst_5 = arith.constant 0.000000e+00 : f32
    %6 = vector.broadcast %cst_5 : f32 to vector<256x32xf32>
    %7 = arith.maximumf %5, %6 : vector<256x32xf32>
    %8 = arith.truncf %7 : vector<256x32xf32> to vector<256x32xbf16>
    %c0_6 = arith.constant 0 : index
    %c0_7 = arith.constant 0 : index
    %9 = vector.load %arg4[%c0_6, %c0_7] : memref<32x32xbf16, #tpu.memory_space<vmem>>, vector<32x32xbf16>
    %cst_8 = arith.constant dense<0.000000e+00> : vector<256x32xf32>
    %10 = tpu.matmul %8, %9, %cst_8 {dimension_numbers = #tpu.dot_dimension_numbers<[1], [0], [0], [1], [0, 0, 1, 1], [], []>} : vector<256x32xbf16>, vector<32x32xbf16>, vector<256x32xf32> -> vector<256x32xf32>
    %c0_9 = arith.constant 0 : index
    %c0_10 = arith.constant 0 : index
    %11 = vector.load %arg5[%c0_9, %c0_10] : memref<1x32xf32, #tpu.memory_space<vmem>>, vector<1x32xf32>
    %12 = vector.broadcast %11 : vector<1x32xf32> to vector<256x32xf32>
    %13 = arith.addf %10, %12 : vector<256x32xf32>
    %cst_11 = arith.constant 0.000000e+00 : f32
    %14 = vector.broadcast %cst_11 : f32 to vector<256x32xf32>
    %15 = arith.maximumf %13, %14 : vector<256x32xf32>
    %16 = arith.truncf %15 : vector<256x32xf32> to vector<256x32xbf16>
    %c0_12 = arith.constant 0 : index
    %c0_13 = arith.constant 0 : index
    %17 = vector.load %arg6[%c0_12, %c0_13] : memref<32x8xbf16, #tpu.memory_space<vmem>>, vector<32x8xbf16>
    %cst_14 = arith.constant dense<0.000000e+00> : vector<256x8xf32>
    %18 = tpu.matmul %16, %17, %cst_14 {dimension_numbers = #tpu.dot_dimension_numbers<[1], [0], [0], [1], [0, 0, 1, 1], [], []>} : vector<256x32xbf16>, vector<32x8xbf16>, vector<256x8xf32> -> vector<256x8xf32>
    %c0_15 = arith.constant 0 : index
    %c0_16 = arith.constant 0 : index
    %19 = vector.load %arg7[%c0_15, %c0_16] : memref<1x8xf32, #tpu.memory_space<vmem>>, vector<1x8xf32>
    %20 = vector.broadcast %19 : vector<1x8xf32> to vector<256x8xf32>
    %21 = arith.addf %18, %20 : vector<256x8xf32>
    %22 = arith.truncf %21 : vector<256x8xf32> to vector<256x8xbf16>
    %c0_17 = arith.constant 0 : index
    %c0_18 = arith.constant 0 : index
    %23 = vector.load %arg8[%c0_17, %c0_18] : memref<256x8xbf16, #tpu.memory_space<vmem>>, vector<256x8xbf16>
    tpu.vector_store %arg8[%c0_17, %c0_18], %22 {strides = array<i32>} : memref<256x8xbf16, #tpu.memory_space<vmem>>, vector<256x8xbf16>,
    return
  }
  func.func @transform_0(%arg0: i32) -> (i32, i32) {
    %c0_i32 = arith.constant 0 : i32
    %c0_i32_0 = arith.constant 0 : i32
    return %arg0, %c0_i32 : i32, i32
  }
  func.func @transform_1(%arg0: i32) -> (i32, i32) {
    %c0_i32 = arith.constant 0 : i32
    %c0_i32_0 = arith.constant 0 : i32
    %c0_i32_1 = arith.constant 0 : i32
    return %c0_i32, %c0_i32_0 : i32, i32
  }
  func.func @transform_2(%arg0: i32) -> (i32, i32) {
    %c0_i32 = arith.constant 0 : i32
    %c0_i32_0 = arith.constant 0 : i32
    %c0_i32_1 = arith.constant 0 : i32
    return %c0_i32, %c0_i32_0 : i32, i32
  }
  func.func @transform_3(%arg0: i32) -> (i32, i32) {
    %c0_i32 = arith.constant 0 : i32
    %c0_i32_0 = arith.constant 0 : i32
    %c0_i32_1 = arith.constant 0 : i32
    return %c0_i32, %c0_i32_0 : i32, i32
  }
  func.func @transform_4(%arg0: i32) -> (i32, i32) {
    %c0_i32 = arith.constant 0 : i32
    %c0_i32_0 = arith.constant 0 : i32
    %c0_i32_1 = arith.constant 0 : i32
    return %c0_i32, %c0_i32_0 : i32, i32
  }
  func.func @transform_5(%arg0: i32) -> (i32, i32) {
    %c0_i32 = arith.constant 0 : i32
    %c0_i32_0 = arith.constant 0 : i32
    %c0_i32_1 = arith.constant 0 : i32
    return %c0_i32, %c0_i32_0 : i32, i32
  }
  func.func @transform_6(%arg0: i32) -> (i32, i32) {
    %c0_i32 = arith.constant 0 : i32
    %c0_i32_0 = arith.constant 0 : i32
    %c0_i32_1 = arith.constant 0 : i32
    return %c0_i32, %c0_i32_0 : i32, i32
  }
  func.func @transform_7(%arg0: i32) -> (i32, i32) {
    %c0_i32 = arith.constant 0 : i32
    %c0_i32_0 = arith.constant 0 : i32
    return %arg0, %c0_i32 : i32, i32
  }
}

</mosaic_0001>

<bundles_post_ra>
// kernel: mlp_forward.2
= control target key start
LH: loop header
LB: loop body
LE: loop exit
PB: predicated region body
PF: predicated region fallthrough
CT: control target
= control target key end

     0   :  { %vm154_vm0 = vcmask 130048   ;;  %vm435_vm1 = vcmask 261120   ;;  %vm1053_vm2 = vcmask 60416   ;;  %s1810_s1 = inlined_call_operand.vmem [shape: bf16[16,32], index: 1, kind: input, shape index: {}]   ;;  %s1811_s0 = inlined_call_operand.vmem [shape: bf16[256,16], index: 0, kind: input, shape index: {}]   ;;  %s1812_s3 = inlined_call_operand.vmem [shape: bf16[32,32], index: 3, kind: input, shape index: {}]   ;;  %s1813_s5 = inlined_call_operand.vmem [shape: bf16[32,8], index: 5, kind: input, shape index: {}]   ;;  %s1814_s2 = inlined_call_operand.vmem [shape: f32[1,32], index: 2, kind: input, shape index: {}]   ;;  %s1815_s4 = inlined_call_operand.vmem [shape: f32[1,32], index: 4, kind: input, shape index: {}]   ;;  %s1816_s6 = inlined_call_operand.vmem [shape: f32[1,8], index: 6, kind: input, shape index: {}]   ;;  %s1817_s7 = inlined_call_operand.vmem [shape: bf16[256,8], index: 7, kind: output, shape index: {}]  }
   0x1   :  { %v1387_v0 = vld [vmem:[%s1810_s1] sm:$0xff]   ;;  %v1389_v2 = vld [vmem:[%s1811_s0 + $0x8] sm:$0xff]   ;;  %v1390_v3 = vld [vmem:[%s1811_s0 + $0x10] sm:$0xff]  }
   0x2   :  { %v1388_v1 = vld [vmem:[%s1811_s0] sm:$0xff]   ;;  %1279 = vmatprep.subr.bf16.mxu0 %v1387_v0  ;;  %1385 = vmatprep.subr.bf16.mxu1 %v1387_v0  ;;  %v1391_v4 = vld [vmem:[%s1811_s0 + $0x18] sm:$0xff]   ;;  %v1397_v7 = vld [vmem:[%s1811_s0 + $0x48] sm:$0xff]  }
   0x3   :  { %1280 = vmatpush3.bf16.msra.mxu0 %v1387_v0  ;;  %1281 = vmatprep.mubr.msk.bf16.mxu0 %vm154_vm0, %v1388_v1  ;;  %v1392_v5 = vld [vmem:[%s1811_s0 + $0x20] sm:$0xff]   ;;  %v1398_v8 = vld [vmem:[%s1811_s0 + $0x50] sm:$0xff]   ;;  %v1399_v9 = vld [vmem:[%s1811_s0 + $0x58] sm:$0xff]  }
   0x4   :  { %1386 = vmatpush3.bf16.msra.mxu1 %v1387_v0  ;;  %v1396_v6 = vld [vmem:[%s1811_s0 + $0x40] sm:$0xff]   ;;  %v1393_v10 = vld [vmem:[%s1811_s0 + $0x28] sm:$0xff]   ;;  %v1394_v14 = vld [vmem:[%s1811_s0 + $0x30] sm:$0xff]  }
   0x5   :  { %1297 = vmatprep.mubr.msk.bf16.mxu1 %vm154_vm0, %v1396_v6  ;;  %v1400_v11 = vld [vmem:[%s1811_s0 + $0x60] sm:$0xff]   ;;  %v1404_v12 = vld [vmem:[%s1812_s3 + $0x8] sm:$0xff]   ;;  %v1402_v16 = vld [vmem:[%s1811_s0 + $0x70] sm:$0xff]  }
   0x6   :  { %1282 = vmatmul.mubr.msk.bf16.vlgmr.msra.gmra.mxu0 %vm154_vm0, %v1389_v2  ;;  %v1405_v13 = vld [vmem:[%s1812_s3] sm:$0xff]   ;;  %1313 = vmatprep.subr.bf16.mxu1 %v1404_v12  ;;  %v1401_v15 = vld [vmem:[%s1811_s0 + $0x68] sm:$0xff]   ;;  %v1395_v17 = vld [vmem:[%s1811_s0 + $0x38] sm:$0xff]  }
   0x7   :  { %1285 = vmatprep.mubr.msk.bf16.mxu0 %vm154_vm0, %v1390_v3  ;;  %1298 = vmatmul.mubr.msk.bf16.vlgmr.msra.gmra.mxu1 %vm154_vm0, %v1397_v7  ;;  %v1403_v18 = vld [vmem:[%s1811_s0 + $0x78] sm:$0xff]   ;;  %v1406_v19 = vld [vmem:[%s1813_s5 + $0x8] sm:$0xff]   ;;  %v1407_v20 = vld [vmem:[%s1813_s5] sm:$0xff]  }
   0x8   :  { %1301 = vmatprep.mubr.msk.bf16.mxu1 %vm154_vm0, %v1398_v8  ;;  %1314 = vmatpush3.bf16.msra.mxu1 %v1404_v12  ;;  %v1530_v23 = vld [vmem:[%s1814_s2] ss:$0 sm:$0xff] }
   0x9   :  { %1315 = vmatprep.subr.bf16.mxu1 %v1405_v13  ;;  %1349 = vmatprep.subr.bf16.mxu0 %v1406_v19 }
   0xa   :  { %1350 = vmatpush3.bf16.msra.mxu0 %v1406_v19 }
   0xb   :  { %1351 = vmatprep.subr.bf16.mxu0 %v1407_v20 }
   0xc   :  { %1316 = vmatpush3.bf16.msra.mxu1 %v1405_v13 }
   0xe   :  { %1286 = vmatmul.mubr.msk.bf16.gmra.mxu0 %vm154_vm0, %v1391_v4 }
   0xf   :  { %1289 = vmatprep.mubr.msk.bf16.mxu0 %vm154_vm0, %v1392_v5  ;;  %1302 = vmatmul.mubr.msk.bf16.gmra.mxu1 %vm154_vm0, %v1399_v9 }
  0x10   :  { %1305 = vmatprep.mubr.msk.bf16.mxu1 %vm154_vm0, %v1400_v11  ;;  %1352 = vmatpush3.bf16.msra.mxu0 %v1407_v20 }
  0x16   :  { %1290 = vmatmul.mubr.msk.bf16.gmra.mxu0 %vm154_vm0, %v1393_v10 }
  0x17   :  { %1293 = vmatprep.mubr.msk.bf16.mxu0 %vm154_vm0, %v1394_v14  ;;  %1306 = vmatmul.mubr.msk.bf16.gmra.mxu1 %vm154_vm0, %v1401_v15 }
  0x18   :  { %1309 = vmatprep.mubr.msk.bf16.mxu1 %vm154_vm0, %v1402_v16 }
  0x1e   :  { %1294 = vmatmul.mubr.msk.bf16.gmra.mxu0 %vm154_vm0, %v1395_v17 }
  0x1f   :  { %1310 = vmatmul.mubr.msk.bf16.gmra.mxu1 %vm154_vm0, %v1403_v18 }
  0xc6   :  { %v1283_v21 = vpop.f32.mrf.mxu0 }
  0xc7   :  { %v246_v27 = vadd.f32 %v1283_v21, %v1530_v23  ;;  %v1535_v29 = vpop.f32.mrf.mxu1 }
  0xc8   :  { %v237_v22 = vpop.f32.mrf.mxu0 }
  0xc9   :  { %v238_v25 = vadd.f32 %v1530_v23, %v237_v22  ;;  %v301_v33 = vpop.f32.mrf.mxu1  ;;  %v366_v36 = vmax.f32 %v246_v27, 0.0 }
  0xca   :  { %v1284_v24 = vpop.f32.mrf.mxu0  ;;  %v302_v11 = vadd.f32 %v1530_v23, %v301_v33 }
  0xcb   :  { %v249_v26 = vadd.f32 %v1284_v24, %v1530_v23  ;;  %v364_v34 = vmax.f32 %v238_v25, 0.0  ;;  %v1538_v38 = vpop.f32.mrf.mxu1 }
  0xcc   :  { %v240_v28 = vpop.f32.mrf.mxu0  ;;  %v380_v20 = vmax.f32 %v302_v11, 0.0 }
  0xcd   :  { %v241_v30 = vadd.f32 %v1530_v23, %v240_v28  ;;  %v367_v31 = vmax.f32 %v249_v26, 0.0  ;;  %v304_v42 = vpop.f32.mrf.mxu1 }
  0xce   :  { %v1287_v32 = vpop.f32.mrf.mxu0  ;;  %v305_v12 = vadd.f32 %v1530_v23, %v304_v42 }
  0xcf   :  { %v365_v35 = vmax.f32 %v241_v30, 0.0  ;;  %v397_v40 = vpack.c.bf16 %v367_v31, %v366_v36  ;;  %v262_v45 = vadd.f32 %v1287_v32, %v1530_v23  ;;  %v1545_v47 = vpop.f32.mrf.mxu1  ;;  %v313_v36 = vadd.f32 %v1538_v38, %v1530_v23 }
  0xd0   :  { %v253_v37 = vpop.f32.mrf.mxu0  ;;  %v381_v22 = vmax.f32 %v305_v12, 0.0  ;;  %v326_v38 = vadd.f32 %v1545_v47, %v1530_v23 }
  0xd1   :  { %v396_v39 = vpack.c.bf16 %v365_v35, %v364_v34  ;;  %v254_v43 = vadd.f32 %v1530_v23, %v253_v37  ;;  %v317_v51 = vpop.f32.mrf.mxu1  ;;  %v370_v54 = vmax.f32 %v262_v45, 0.0  ;;  %v310_v34 = vadd.f32 %v1535_v29, %v1530_v23 }
  0xd2   :  { %v1288_v41 = vpop.f32.mrf.mxu0  ;;  %v404_v31 = vpack.c.bf16 %v381_v22, %v380_v20  ;;  %v318_v32 = vadd.f32 %v1530_v23, %v317_v51  ;;  %v383_v42 = vmax.f32 %v313_v36, 0.0 }
  0xd3   :  { %v265_v44 = vadd.f32 %v1288_v41, %v1530_v23  ;;  %1317 = vmatprep.mubr.msk.bf16.mxu1 %vm435_vm1, %v396_v39  ;;  %v368_v52 = vmax.f32 %v254_v43, 0.0  ;;  %v1304_v56 = vpop.f32.mrf.mxu1  ;;  %v382_v41 = vmax.f32 %v310_v34, 0.0 }
  0xd4   :  { %v256_v46 = vpop.f32.mrf.mxu0  ;;  %1318 = vmatmul.mubr.msk.bf16.vlgmr.msra.gmra.mxu1 %vm435_vm1, %v397_v40  ;;  %v384_v39 = vmax.f32 %v318_v32, 0.0 }
  0xd5   :  { %v257_v48 = vadd.f32 %v1530_v23, %v256_v46  ;;  %v371_v49 = vmax.f32 %v265_v44, 0.0  ;;  %v320_v60 = vpop.f32.mrf.mxu1  ;;  %v405_v46 = vpack.c.bf16 %v383_v42, %v382_v41 }
  0xd6   :  { %v1291_v50 = vpop.f32.mrf.mxu0  ;;  %v321_v33 = vadd.f32 %v1530_v23, %v320_v60 }
  0xd7   :  { %v369_v53 = vmax.f32 %v257_v48, 0.0  ;;  %v399_v58 = vpack.c.bf16 %v371_v49, %v370_v54  ;;  %v278_v63 = vadd.f32 %v1291_v50, %v1530_v23  ;;  %v1553_v1 = vpop.f32.mrf.mxu1  ;;  %v329_v48 = vadd.f32 %v1304_v56, %v1530_v23 }
  0xd8   :  { %v269_v55 = vpop.f32.mrf.mxu0  ;;  %v385_v40 = vmax.f32 %v321_v33, 0.0  ;;  %v342_v47 = vadd.f32 %v1553_v1, %v1530_v23 }
  0xd9   :  { %v398_v57 = vpack.c.bf16 %v369_v53, %v368_v52  ;;  %v270_v61 = vadd.f32 %v1530_v23, %v269_v55  ;;  %v333_v5 = vpop.f32.mrf.mxu1  ;;  %v374_v8 = vmax.f32 %v278_v63, 0.0  ;;  %v386_v52 = vmax.f32 %v326_v38, 0.0 }
  0xda   :  { %v1292_v59 = vpop.f32.mrf.mxu0  ;;  %v406_v44 = vpack.c.bf16 %v385_v40, %v384_v39  ;;  %v334_v45 = vadd.f32 %v1530_v23, %v333_v5  ;;  %v387_v53 = vmax.f32 %v329_v48, 0.0 }
  0xdb   :  { %v281_v62 = vadd.f32 %v1292_v59, %v1530_v23  ;;  %1321 = vmatprep.mubr.msk.bf16.mxu1 %vm435_vm1, %v398_v57  ;;  %v372_v6 = vmax.f32 %v270_v61, 0.0  ;;  %v1308_v15 = vpop.f32.mrf.mxu1 }
  0xdc   :  { %v272_v0 = vpop.f32.mrf.mxu0  ;;  %1322 = vmatmul.mubr.msk.bf16.gmra.mxu1 %vm435_vm1, %v399_v58  ;;  %v388_v50 = vmax.f32 %v334_v45, 0.0  ;;  %v407_v59 = vpack.c.bf16 %v387_v53, %v386_v52  ;;  %v345_v56 = vadd.f32 %v1308_v15, %v1530_v23 }
  0xdd   :  { %v273_v2 = vadd.f32 %v1530_v23, %v272_v0  ;;  %v375_v3 = vmax.f32 %v281_v62, 0.0  ;;  %v336_v25 = vpop.f32.mrf.mxu1  ;;  %v390_v62 = vmax.f32 %v342_v47, 0.0 }
  0xde   :  { %v1295_v4 = vpop.f32.mrf.mxu0  ;;  %v337_v29 = vadd.f32 %v1530_v23, %v336_v25  ;;  %v391_v63 = vmax.f32 %v345_v56, 0.0 }
  0xdf   :  { %v373_v7 = vmax.f32 %v273_v2, 0.0  ;;  %v401_v13 = vpack.c.bf16 %v375_v3, %v374_v8  ;;  %v294_v18 = vadd.f32 %v1295_v4, %v1530_v23  ;;  %v1311_v37 = vpop.f32.mrf.mxu1 }
  0xe0   :  { %v285_v9 = vpop.f32.mrf.mxu0  ;;  %v389_v51 = vmax.f32 %v337_v29, 0.0  ;;  %v409_v2 = vpack.c.bf16 %v391_v63, %v390_v62  ;;  %v358_v3 = vadd.f32 %v1311_v37, %v1530_v23 }
  0xe1   :  { %v400_v10 = vpack.c.bf16 %v373_v7, %v372_v6  ;;  %v286_v16 = vadd.f32 %v1530_v23, %v285_v9  ;;  %v378_v28 = vmax.f32 %v294_v18, 0.0  ;;  %v349_v43 = vpop.f32.mrf.mxu1  ;;  %v1595_v9 = vld [vmem:[%s1815_s4] ss:$0 sm:$0xff] }
  0xe2   :  { %v1296_v14 = vpop.f32.mrf.mxu0  ;;  %v408_v55 = vpack.c.bf16 %v389_v51, %v388_v50  ;;  %v350_v57 = vadd.f32 %v1530_v23, %v349_v43  ;;  %v394_v1 = vmax.f32 %v358_v3, 0.0 }
  0xe3   :  { %v297_v17 = vadd.f32 %v1296_v14, %v1530_v23  ;;  %1325 = vmatprep.mubr.msk.bf16.mxu1 %vm435_vm1, %v400_v10  ;;  %v376_v26 = vmax.f32 %v286_v16, 0.0  ;;  %v1312_v49 = vpop.f32.mrf.mxu1 }
  0xe4   :  { %v288_v19 = vpop.f32.mrf.mxu0  ;;  %1326 = vmatmul.mubr.msk.bf16.gmra.mxu1 %vm435_vm1, %v401_v13  ;;  %v392_v60 = vmax.f32 %v350_v57, 0.0  ;;  %v361_v4 = vadd.f32 %v1312_v49, %v1530_v23 }
  0xe5   :  { %v289_v21 = vadd.f32 %v1530_v23, %v288_v19  ;;  %v379_v24 = vmax.f32 %v297_v17, 0.0  ;;  %v352_v54 = vpop.f32.mrf.mxu1 }
  0xe6   :  { %v353_v58 = vadd.f32 %v1530_v23, %v352_v54  ;;  %v395_v5 = vmax.f32 %v361_v4, 0.0 }
  0xe7   :  { %v377_v27 = vmax.f32 %v289_v21, 0.0  ;;  %v403_v35 = vpack.c.bf16 %v379_v24, %v378_v28 }
  0xe8   :  { %v393_v61 = vmax.f32 %v353_v58, 0.0  ;;  %v411_v6 = vpack.c.bf16 %v395_v5, %v394_v1 }
  0xe9   :  { %v402_v30 = vpack.c.bf16 %v377_v27, %v376_v26 }
  0xea   :  { %v410_v0 = vpack.c.bf16 %v393_v61, %v392_v60 }
  0xeb   :  { %1329 = vmatprep.mubr.msk.bf16.mxu1 %vm435_vm1, %v402_v30 }
  0xec   :  { %1330 = vmatmul.mubr.msk.bf16.gmra.mxu1 %vm435_vm1, %v403_v35 }
  0xed   :  { %1333 = vmatprep.mubr.msk.bf16.mxu1 %vm435_vm1, %v404_v31 }
  0xf4   :  { %1334 = vmatmul.mubr.msk.bf16.gmra.mxu1 %vm435_vm1, %v405_v46 }
  0xf5   :  { %1337 = vmatprep.mubr.msk.bf16.mxu1 %vm435_vm1, %v406_v44 }
  0xfc   :  { %1338 = vmatmul.mubr.msk.bf16.gmra.mxu1 %vm435_vm1, %v407_v59 }
  0xfd   :  { %1341 = vmatprep.mubr.msk.bf16.mxu1 %vm435_vm1, %v408_v55 }
 0x104   :  { %1342 = vmatmul.mubr.msk.bf16.gmra.mxu1 %vm435_vm1, %v409_v2 }
 0x105   :  { %1345 = vmatprep.mubr.msk.bf16.mxu1 %vm435_vm1, %v410_v0 }
 0x10c   :  { %1346 = vmatmul.mubr.msk.bf16.gmra.mxu1 %vm435_vm1, %v411_v6 }
 0x194   :  { %v1319_v7 = vpop.f32.mrf.mxu1 }
 0x195   :  { %v527_v12 = vadd.f32 %v1319_v7, %v1595_v9 }
 0x196   :  { %v518_v8 = vpop.f32.mrf.mxu1 }
 0x197   :  { %v519_v11 = vadd.f32 %v1595_v9, %v518_v8  ;;  %v647_v19 = vmax.f32 %v527_v12, 0.0 }
 0x198   :  { %v1320_v10 = vpop.f32.mrf.mxu1 }
 0x199   :  { %v530_v23 = vadd.f32 %v1320_v10, %v1595_v9  ;;  %v645_v17 = vmax.f32 %v519_v11, 0.0 }
 0x19a   :  { %v521_v13 = vpop.f32.mrf.mxu1 }
 0x19b   :  { %v522_v14 = vadd.f32 %v1595_v9, %v521_v13  ;;  %v648_v15 = vmax.f32 %v530_v23, 0.0 }
 0x19c   :  { %v1323_v16 = vpop.f32.mrf.mxu1 }
 0x19d   :  { %v646_v18 = vmax.f32 %v522_v14, 0.0  ;;  %v678_v22 = vpack.c.bf16 %v648_v15, %v647_v19  ;;  %v543_v27 = vadd.f32 %v1323_v16, %v1595_v9 }
 0x19e   :  { %v534_v20 = vpop.f32.mrf.mxu1 }
 0x19f   :  { %v677_v21 = vpack.c.bf16 %v646_v18, %v645_v17  ;;  %v535_v25 = vadd.f32 %v1595_v9, %v534_v20  ;;  %v651_v35 = vmax.f32 %v543_v27, 0.0 }
 0x1a0   :  { %v1324_v24 = vpop.f32.mrf.mxu1 }
 0x1a1   :  { %v546_v26 = vadd.f32 %v1324_v24, %v1595_v9  ;;  %1353 = vmatprep.mubr.msk.bf16.mxu0 %vm435_vm1, %v677_v21  ;;  %v649_v33 = vmax.f32 %v535_v25, 0.0 }
 0x1a2   :  { %v537_v28 = vpop.f32.mrf.mxu1  ;;  %1354 = vmatmul.mubr.msk.bf16.vlgmr.msra.gmra.mxu0 %vm435_vm1, %v678_v22 }
 0x1a3   :  { %v538_v30 = vadd.f32 %v1595_v9, %v537_v28  ;;  %v652_v31 = vmax.f32 %v546_v26, 0.0 }
 0x1a4   :  { %v1327_v32 = vpop.f32.mrf.mxu1 }
 0x1a5   :  { %v650_v34 = vmax.f32 %v538_v30, 0.0  ;;  %v680_v39 = vpack.c.bf16 %v652_v31, %v651_v35  ;;  %v559_v43 = vadd.f32 %v1327_v32, %v1595_v9 }
 0x1a6   :  { %v550_v36 = vpop.f32.mrf.mxu1 }
 0x1a7   :  { %v679_v37 = vpack.c.bf16 %v650_v34, %v649_v33  ;;  %v551_v41 = vadd.f32 %v1595_v9, %v550_v36  ;;  %v655_v49 = vmax.f32 %v559_v43, 0.0 }
 0x1a8   :  { %v1328_v40 = vpop.f32.mrf.mxu1 }
 0x1a9   :  { %v562_v42 = vadd.f32 %v1328_v40, %v1595_v9  ;;  %1357 = vmatprep.mubr.msk.bf16.mxu0 %vm435_vm1, %v679_v37  ;;  %v653_v38 = vmax.f32 %v551_v41, 0.0 }
 0x1aa   :  { %v553_v44 = vpop.f32.mrf.mxu1  ;;  %1358 = vmatmul.mubr.msk.bf16.gmra.mxu0 %vm435_vm1, %v680_v39 }
 0x1ab   :  { %v554_v45 = vadd.f32 %v1595_v9, %v553_v44  ;;  %v656_v29 = vmax.f32 %v562_v42, 0.0 }
 0x1ac   :  { %v1331_v46 = vpop.f32.mrf.mxu1 }
 0x1ad   :  { %v654_v48 = vmax.f32 %v554_v45, 0.0  ;;  %v682_v52 = vpack.c.bf16 %v656_v29, %v655_v49  ;;  %v575_v57 = vadd.f32 %v1331_v46, %v1595_v9 }
 0x1ae   :  { %v566_v50 = vpop.f32.mrf.mxu1 }
 0x1af   :  { %v681_v51 = vpack.c.bf16 %v654_v48, %v653_v38  ;;  %v567_v54 = vadd.f32 %v1595_v9, %v566_v50  ;;  %v659_v62 = vmax.f32 %v575_v57, 0.0 }
 0x1b0   :  { %v1332_v53 = vpop.f32.mrf.mxu1 }
 0x1b1   :  { %v578_v55 = vadd.f32 %v1332_v53, %v1595_v9  ;;  %1361 = vmatprep.mubr.msk.bf16.mxu0 %vm435_vm1, %v681_v51  ;;  %v657_v60 = vmax.f32 %v567_v54, 0.0 }
 0x1b2   :  { %v569_v58 = vpop.f32.mrf.mxu1  ;;  %1362 = vmatmul.mubr.msk.bf16.gmra.mxu0 %vm435_vm1, %v682_v52 }
 0x1b3   :  { %v570_v59 = vadd.f32 %v1595_v9, %v569_v58  ;;  %v660_v47 = vmax.f32 %v578_v55, 0.0 }
 0x1b4   :  { %v1335_v56 = vpop.f32.mrf.mxu1 }
 0x1b5   :  { %v658_v61 = vmax.f32 %v570_v59, 0.0  ;;  %v684_v2 = vpack.c.bf16 %v660_v47, %v659_v62  ;;  %v591_v5 = vadd.f32 %v1335_v56, %v1595_v9  ;;  %v1648_v59 = vld [vmem:[%s1816_s6] ss:$0 sm:$0xff] }
 0x1b6   :  { %v582_v63 = vpop.f32.mrf.mxu1 }
 0x1b7   :  { %v683_v0 = vpack.c.bf16 %v658_v61, %v657_v60  ;;  %v583_v4 = vadd.f32 %v1595_v9, %v582_v63  ;;  %v663_v12 = vmax.f32 %v591_v5, 0.0 }
 0x1b8   :  { %v1336_v3 = vpop.f32.mrf.mxu1 }
 0x1b9   :  { %v594_v1 = vadd.f32 %v1336_v3, %v1595_v9  ;;  %1365 = vmatprep.mubr.msk.bf16.mxu0 %vm435_vm1, %v683_v0  ;;  %v661_v11 = vmax.f32 %v583_v4, 0.0 }
 0x1ba   :  { %v585_v6 = vpop.f32.mrf.mxu1  ;;  %1366 = vmatmul.mubr.msk.bf16.gmra.mxu0 %vm435_vm1, %v684_v2 }
 0x1bb   :  { %v586_v7 = vadd.f32 %v1595_v9, %v585_v6  ;;  %v664_v8 = vmax.f32 %v594_v1, 0.0 }
 0x1bc   :  { %v1339_v10 = vpop.f32.mrf.mxu1 }
 0x1bd   :  { %v662_v23 = vmax.f32 %v586_v7, 0.0  ;;  %v686_v15 = vpack.c.bf16 %v664_v8, %v663_v12  ;;  %v607_v19 = vadd.f32 %v1339_v10, %v1595_v9 }
 0x1be   :  { %v598_v13 = vpop.f32.mrf.mxu1 }
 0x1bf   :  { %v685_v14 = vpack.c.bf16 %v662_v23, %v661_v11  ;;  %v599_v17 = vadd.f32 %v1595_v9, %v598_v13  ;;  %v667_v27 = vmax.f32 %v607_v19, 0.0 }
 0x1c0   :  { %v1340_v16 = vpop.f32.mrf.mxu1 }
 0x1c1   :  { %v610_v18 = vadd.f32 %v1340_v16, %v1595_v9  ;;  %1369 = vmatprep.mubr.msk.bf16.mxu0 %vm435_vm1, %v685_v14  ;;  %v665_v25 = vmax.f32 %v599_v17, 0.0 }
 0x1c2   :  { %v601_v20 = vpop.f32.mrf.mxu1  ;;  %1370 = vmatmul.mubr.msk.bf16.gmra.mxu0 %vm435_vm1, %v686_v15 }
 0x1c3   :  { %v602_v21 = vadd.f32 %v1595_v9, %v601_v20  ;;  %v668_v22 = vmax.f32 %v610_v18, 0.0 }
 0x1c4   :  { %v1343_v24 = vpop.f32.mrf.mxu1 }
 0x1c5   :  { %v666_v26 = vmax.f32 %v602_v21, 0.0  ;;  %v688_v31 = vpack.c.bf16 %v668_v22, %v667_v27  ;;  %v623_v35 = vadd.f32 %v1343_v24, %v1595_v9 }
 0x1c6   :  { %v614_v28 = vpop.f32.mrf.mxu1 }
 0x1c7   :  { %v687_v30 = vpack.c.bf16 %v666_v26, %v665_v25  ;;  %v615_v33 = vadd.f32 %v1595_v9, %v614_v28  ;;  %v671_v43 = vmax.f32 %v623_v35, 0.0 }
 0x1c8   :  { %v1344_v32 = vpop.f32.mrf.mxu1 }
 0x1c9   :  { %v626_v34 = vadd.f32 %v1344_v32, %v1595_v9  ;;  %1373 = vmatprep.mubr.msk.bf16.mxu0 %vm435_vm1, %v687_v30  ;;  %v669_v41 = vmax.f32 %v615_v33, 0.0 }
 0x1ca   :  { %v617_v36 = vpop.f32.mrf.mxu1  ;;  %1374 = vmatmul.mubr.msk.bf16.gmra.mxu0 %vm435_vm1, %v688_v31 }
 0x1cb   :  { %v618_v37 = vadd.f32 %v1595_v9, %v617_v36  ;;  %v672_v39 = vmax.f32 %v626_v34, 0.0 }
 0x1cc   :  { %v1347_v40 = vpop.f32.mrf.mxu1 }
 0x1cd   :  { %v670_v42 = vmax.f32 %v618_v37, 0.0  ;;  %v690_v29 = vpack.c.bf16 %v672_v39, %v671_v43  ;;  %v639_v49 = vadd.f32 %v1347_v40, %v1595_v9 }
 0x1ce   :  { %v630_v44 = vpop.f32.mrf.mxu1 }
 0x1cf   :  { %v689_v45 = vpack.c.bf16 %v670_v42, %v669_v41  ;;  %v631_v38 = vadd.f32 %v1595_v9, %v630_v44  ;;  %v675_v55 = vmax.f32 %v639_v49, 0.0 }
 0x1d0   :  { %v1348_v46 = vpop.f32.mrf.mxu1 }
 0x1d1   :  { %v642_v48 = vadd.f32 %v1348_v46, %v1595_v9  ;;  %1377 = vmatprep.mubr.msk.bf16.mxu0 %vm435_vm1, %v689_v45  ;;  %v673_v53 = vmax.f32 %v631_v38, 0.0 }
 0x1d2   :  { %v633_v50 = vpop.f32.mrf.mxu1  ;;  %1378 = vmatmul.mubr.msk.bf16.gmra.mxu0 %vm435_vm1, %v690_v29 }
 0x1d3   :  { %v634_v51 = vadd.f32 %v1595_v9, %v633_v50  ;;  %v676_v52 = vmax.f32 %v642_v48, 0.0 }
 0x1d5   :  { %v674_v54 = vmax.f32 %v634_v51, 0.0  ;;  %v692_v58 = vpack.c.bf16 %v676_v52, %v675_v55 }
 0x1d7   :  { %v691_v57 = vpack.c.bf16 %v674_v54, %v673_v53 }
 0x1d9   :  { %1381 = vmatprep.mubr.msk.bf16.mxu0 %vm435_vm1, %v691_v57 }
 0x1da   :  { %1382 = vmatmul.mubr.msk.bf16.gmra.mxu0 %vm435_vm1, %v692_v58 }
 0x262   :  { %v1355_v47 = vpop.f32.mrf.mxu0 }
 0x263   :  { %v807_v56 = vadd.f32 %v1355_v47, %v1648_v59 }
 0x264   :  { %v798_v9 = vpop.f32.mrf.mxu0 }
 0x265   :  { %v1196_v60 = vpack.c.bf16 %v807_v56, %v807_v56  ;;  %v799_v61 = vadd.f32 %v1648_v59, %v798_v9 }
 0x266   :  { %v1356_v62 = vpop.f32.mrf.mxu0 }
 0x267   :  { %1056 = vst.msk [vmem:[%s1817_s7 + $0x8] sm:$0xf] %vm1053_vm2, %v1196_v60  ;;  %v1194_v63 = vpack.c.bf16 %v799_v61, %v799_v61  ;;  %v810_v0 = vadd.f32 %v1356_v62, %v1648_v59 }
 0x268   :  { %v801_v2 = vpop.f32.mrf.mxu0 }
 0x269   :  { %1054 = vst.msk [vmem:[%s1817_s7] sm:$0xf] %vm1053_vm2, %v1194_v63  ;;  %v1197_v3 = vpack.c.bf16 %v810_v0, %v810_v0  ;;  %v802_v4 = vadd.f32 %v1648_v59, %v801_v2 }
 0x26a   :  { %v1359_v1 = vpop.f32.mrf.mxu0 }
 0x26b   :  { %1057 = vst.msk [vmem:[%s1817_s7 + $0xc] sm:$0xf] %vm1053_vm2, %v1197_v3  ;;  %v1195_v5 = vpack.c.bf16 %v802_v4, %v802_v4  ;;  %v823_v6 = vadd.f32 %v1359_v1, %v1648_v59 }
 0x26c   :  { %v814_v7 = vpop.f32.mrf.mxu0 }
 0x26d   :  { %1055 = vst.msk [vmem:[%s1817_s7 + $0x4] sm:$0xf] %vm1053_vm2, %v1195_v5  ;;  %v1200_v8 = vpack.c.bf16 %v823_v6, %v823_v6  ;;  %v815_v10 = vadd.f32 %v1648_v59, %v814_v7 }
 0x26e   :  { %v1360_v11 = vpop.f32.mrf.mxu0 }
 0x26f   :  { %1060 = vst.msk [vmem:[%s1817_s7 + $0x18] sm:$0xf] %vm1053_vm2, %v1200_v8  ;;  %v1198_v23 = vpack.c.bf16 %v815_v10, %v815_v10  ;;  %v826_v12 = vadd.f32 %v1360_v11, %v1648_v59 }
 0x270   :  { %v817_v13 = vpop.f32.mrf.mxu0 }
 0x271   :  { %1058 = vst.msk [vmem:[%s1817_s7 + $0x10] sm:$0xf] %vm1053_vm2, %v1198_v23  ;;  %v1201_v14 = vpack.c.bf16 %v826_v12, %v826_v12  ;;  %v818_v15 = vadd.f32 %v1648_v59, %v817_v13 }
 0x272   :  { %v1363_v16 = vpop.f32.mrf.mxu0 }
 0x273   :  { %1061 = vst.msk [vmem:[%s1817_s7 + $0x1c] sm:$0xf] %vm1053_vm2, %v1201_v14  ;;  %v1199_v17 = vpack.c.bf16 %v818_v15, %v818_v15  ;;  %v839_v18 = vadd.f32 %v1363_v16, %v1648_v59 }
 0x274   :  { %v830_v19 = vpop.f32.mrf.mxu0 }
 0x275   :  { %1059 = vst.msk [vmem:[%s1817_s7 + $0x14] sm:$0xf] %vm1053_vm2, %v1199_v17  ;;  %v1204_v20 = vpack.c.bf16 %v839_v18, %v839_v18  ;;  %v831_v21 = vadd.f32 %v1648_v59, %v830_v19 }
 0x276   :  { %v1364_v22 = vpop.f32.mrf.mxu0 }
 0x277   :  { %1064 = vst.msk [vmem:[%s1817_s7 + $0x28] sm:$0xf] %vm1053_vm2, %v1204_v20  ;;  %v1202_v24 = vpack.c.bf16 %v831_v21, %v831_v21  ;;  %v842_v25 = vadd.f32 %v1364_v22, %v1648_v59 }
 0x278   :  { %v833_v26 = vpop.f32.mrf.mxu0 }
 0x279   :  { %1062 = vst.msk [vmem:[%s1817_s7 + $0x20] sm:$0xf] %vm1053_vm2, %v1202_v24  ;;  %v1205_v27 = vpack.c.bf16 %v842_v25, %v842_v25  ;;  %v834_v28 = vadd.f32 %v1648_v59, %v833_v26 }
 0x27a   :  { %v1367_v30 = vpop.f32.mrf.mxu0 }
 0x27b   :  { %1065 = vst.msk [vmem:[%s1817_s7 + $0x2c] sm:$0xf] %vm1053_vm2, %v1205_v27  ;;  %v1203_v31 = vpack.c.bf16 %v834_v28, %v834_v28  ;;  %v855_v32 = vadd.f32 %v1367_v30, %v1648_v59 }
 0x27c   :  { %v846_v33 = vpop.f32.mrf.mxu0 }
 0x27d   :  { %1063 = vst.msk [vmem:[%s1817_s7 + $0x24] sm:$0xf] %vm1053_vm2, %v1203_v31  ;;  %v1208_v34 = vpack.c.bf16 %v855_v32, %v855_v32  ;;  %v847_v35 = vadd.f32 %v1648_v59, %v846_v33 }
 0x27e   :  { %v1368_v36 = vpop.f32.mrf.mxu0 }
 0x27f   :  { %1068 = vst.msk [vmem:[%s1817_s7 + $0x38] sm:$0xf] %vm1053_vm2, %v1208_v34  ;;  %v1206_v37 = vpack.c.bf16 %v847_v35, %v847_v35  ;;  %v858_v39 = vadd.f32 %v1368_v36, %v1648_v59 }
 0x280   :  { %v849_v40 = vpop.f32.mrf.mxu0 }
 0x281   :  { %1066 = vst.msk [vmem:[%s1817_s7 + $0x30] sm:$0xf] %vm1053_vm2, %v1206_v37  ;;  %v1209_v41 = vpack.c.bf16 %v858_v39, %v858_v39  ;;  %v850_v42 = vadd.f32 %v1648_v59, %v849_v40 }
 0x282   :  { %v1371_v43 = vpop.f32.mrf.mxu0 }
 0x283   :  { %1069 = vst.msk [vmem:[%s1817_s7 + $0x3c] sm:$0xf] %vm1053_vm2, %v1209_v41  ;;  %v1207_v44 = vpack.c.bf16 %v850_v42, %v850_v42  ;;  %v871_v45 = vadd.f32 %v1371_v43, %v1648_v59 }
 0x284   :  { %v862_v29 = vpop.f32.mrf.mxu0 }
 0x285   :  { %1067 = vst.msk [vmem:[%s1817_s7 + $0x34] sm:$0xf] %vm1053_vm2, %v1207_v44  ;;  %v1212_v46 = vpack.c.bf16 %v871_v45, %v871_v45  ;;  %v863_v38 = vadd.f32 %v1648_v59, %v862_v29 }
 0x286   :  { %v1372_v48 = vpop.f32.mrf.mxu0 }
 0x287   :  { %1072 = vst.msk [vmem:[%s1817_s7 + $0x48] sm:$0xf] %vm1053_vm2, %v1212_v46  ;;  %v1210_v49 = vpack.c.bf16 %v863_v38, %v863_v38  ;;  %v874_v50 = vadd.f32 %v1372_v48, %v1648_v59 }
 0x288   :  { %v865_v51 = vpop.f32.mrf.mxu0 }
 0x289   :  { %1070 = vst.msk [vmem:[%s1817_s7 + $0x40] sm:$0xf] %vm1053_vm2, %v1210_v49  ;;  %v1213_v52 = vpack.c.bf16 %v874_v50, %v874_v50  ;;  %v866_v53 = vadd.f32 %v1648_v59, %v865_v51 }
 0x28a   :  { %v1375_v54 = vpop.f32.mrf.mxu0 }
 0x28b   :  { %1073 = vst.msk [vmem:[%s1817_s7 + $0x4c] sm:$0xf] %vm1053_vm2, %v1213_v52  ;;  %v1211_v55 = vpack.c.bf16 %v866_v53, %v866_v53  ;;  %v887_v57 = vadd.f32 %v1375_v54, %v1648_v59 }
 0x28c   :  { %v878_v58 = vpop.f32.mrf.mxu0 }
 0x28d   :  { %1071 = vst.msk [vmem:[%s1817_s7 + $0x44] sm:$0xf] %vm1053_vm2, %v1211_v55  ;;  %v1216_v47 = vpack.c.bf16 %v887_v57, %v887_v57  ;;  %v879_v56 = vadd.f32 %v1648_v59, %v878_v58 }
 0x28e   :  { %v1376_v9 = vpop.f32.mrf.mxu0 }
 0x28f   :  { %1076 = vst.msk [vmem:[%s1817_s7 + $0x58] sm:$0xf] %vm1053_vm2, %v1216_v47  ;;  %v1214_v60 = vpack.c.bf16 %v879_v56, %v879_v56  ;;  %v890_v61 = vadd.f32 %v1376_v9, %v1648_v59 }
 0x290   :  { %v881_v62 = vpop.f32.mrf.mxu0 }
 0x291   :  { %1074 = vst.msk [vmem:[%s1817_s7 + $0x50] sm:$0xf] %vm1053_vm2, %v1214_v60  ;;  %v1217_v63 = vpack.c.bf16 %v890_v61, %v890_v61  ;;  %v882_v0 = vadd.f32 %v1648_v59, %v881_v62 }
 0x292   :  { %v1379_v2 = vpop.f32.mrf.mxu0 }
 0x293   :  { %1077 = vst.msk [vmem:[%s1817_s7 + $0x5c] sm:$0xf] %vm1053_vm2, %v1217_v63  ;;  %v1215_v3 = vpack.c.bf16 %v882_v0, %v882_v0  ;;  %v903_v4 = vadd.f32 %v1379_v2, %v1648_v59 }
 0x294   :  { %v894_v1 = vpop.f32.mrf.mxu0 }
 0x295   :  { %1075 = vst.msk [vmem:[%s1817_s7 + $0x54] sm:$0xf] %vm1053_vm2, %v1215_v3  ;;  %v1220_v5 = vpack.c.bf16 %v903_v4, %v903_v4  ;;  %v895_v6 = vadd.f32 %v1648_v59, %v894_v1 }
 0x296   :  { %v1380_v7 = vpop.f32.mrf.mxu0 }
 0x297   :  { %1080 = vst.msk [vmem:[%s1817_s7 + $0x68] sm:$0xf] %vm1053_vm2, %v1220_v5  ;;  %v1218_v8 = vpack.c.bf16 %v895_v6, %v895_v6  ;;  %v906_v10 = vadd.f32 %v1380_v7, %v1648_v59 }
 0x298   :  { %v897_v11 = vpop.f32.mrf.mxu0 }
 0x299   :  { %1078 = vst.msk [vmem:[%s1817_s7 + $0x60] sm:$0xf] %vm1053_vm2, %v1218_v8  ;;  %v1221_v23 = vpack.c.bf16 %v906_v10, %v906_v10  ;;  %v898_v12 = vadd.f32 %v1648_v59, %v897_v11 }
 0x29a   :  { %v1383_v13 = vpop.f32.mrf.mxu0 }
 0x29b   :  { %1081 = vst.msk [vmem:[%s1817_s7 + $0x6c] sm:$0xf] %vm1053_vm2, %v1221_v23  ;;  %v1219_v14 = vpack.c.bf16 %v898_v12, %v898_v12  ;;  %v919_v15 = vadd.f32 %v1383_v13, %v1648_v59 }
 0x29c   :  { %v910_v16 = vpop.f32.mrf.mxu0 }
 0x29d   :  { %1079 = vst.msk [vmem:[%s1817_s7 + $0x64] sm:$0xf] %vm1053_vm2, %v1219_v14  ;;  %v1224_v17 = vpack.c.bf16 %v919_v15, %v919_v15  ;;  %v911_v18 = vadd.f32 %v1648_v59, %v910_v16 }
 0x29e   :  { %v1384_v19 = vpop.f32.mrf.mxu0 }
 0x29f   :  { %1084 = vst.msk [vmem:[%s1817_s7 + $0x78] sm:$0xf] %vm1053_vm2, %v1224_v17  ;;  %v1222_v20 = vpack.c.bf16 %v911_v18, %v911_v18  ;;  %v922_v21 = vadd.f32 %v1384_v19, %v1648_v59 }
 0x2a0   :  { %v913_v22 = vpop.f32.mrf.mxu0 }
 0x2a1   :  { %1082 = vst.msk [vmem:[%s1817_s7 + $0x70] sm:$0xf] %vm1053_vm2, %v1222_v20  ;;  %v1225_v24 = vpack.c.bf16 %v922_v21, %v922_v21  ;;  %v914_v25 = vadd.f32 %v1648_v59, %v913_v22 }
 0x2a3   :  { %1085 = vst.msk [vmem:[%s1817_s7 + $0x7c] sm:$0xf] %vm1053_vm2, %v1225_v24  ;;  %v1223_v26 = vpack.c.bf16 %v914_v25, %v914_v25 }
 0x2a5   :  { %1083 = vst.msk [vmem:[%s1817_s7 + $0x74] sm:$0xf] %vm1053_vm2, %v1223_v26 }

// kernel: mlp_forward.3
= control target key start
LH: loop header
LB: loop body
LE: loop exit
PB: predicated region body
PF: predicated region fallthrough
CT: control target
= control target key end

     0   :  { %vm16_vm0 = vcmask 64512   ;;  %v1451_v48 = vmov 0.0   ;;  %s2123_s1 = inlined_call_operand.vmem [shape: bf16[256,8], index: 1, kind: input, shape index: {}]   ;;  %s2124_s0 = inlined_call_operand.vmem [shape: bf16[256,256], index: 0, kind: input, shape index: {}]   ;;  %s2125_s2 = inlined_call_operand.vmem [shape: f32[256,8], index: 2, kind: output, shape index: {}]  }
   0x1   :  { %v1259_v0 = vld [vmem:[%s2123_s1 + $0x78] sm:$0xff]   ;;  %v1261_v2 = vld [vmem:[%s2123_s1 + $0x70] sm:$0xff]   ;;  %v1263_v4 = vld [vmem:[%s2123_s1 + $0x68] sm:$0xff]   ;;  %17 = vst.msk [vmem:[#allocation2] sm:$0xff] %vm16_vm0, %v1451_v48 }
   0x2   :  { %v1260_v1 = vld [vmem:[%s2123_s1 + $0x38] sm:$0xff]   ;;  %1130 = vmatprep.subr.bf16.mxu0 %v1259_v0  ;;  %1242 = vmatprep.subr.bf16.mxu1 %v1259_v0  ;;  %v1262_v3 = vld [vmem:[%s2123_s1 + $0x30] sm:$0xff]   ;;  %v1264_v5 = vld [vmem:[%s2123_s1 + $0x28] sm:$0xff]   ;;  %18 = vst.msk [vmem:[#allocation2 + $0x8] sm:$0xff] %vm16_vm0, %v1451_v48 }
   0x3   :  { %1131 = vmatpush3.bf16.msra.mxu0 %v1260_v1  ;;  %1250 = vmatpush3.bf16.msra.mxu1 %v1260_v1  ;;  %v1265_v6 = vld [vmem:[%s2123_s1 + $0x60] sm:$0xff]   ;;  %v1267_v8 = vld [vmem:[%s2123_s1 + $0x58] sm:$0xff]   ;;  %v1269_v10 = vld [vmem:[%s2123_s1 + $0x50] sm:$0xff]   ;;  %19 = vst.msk [vmem:[#allocation2 + $0x10] sm:$0xff] %vm16_vm0, %v1451_v48 }
   0x4   :  { %1132 = vmatprep.subr.bf16.mxu0 %v1261_v2  ;;  %1243 = vmatprep.subr.bf16.mxu1 %v1261_v2  ;;  %v1266_v7 = vld [vmem:[%s2123_s1 + $0x20] sm:$0xff]   ;;  %v1268_v9 = vld [vmem:[%s2123_s1 + $0x18] sm:$0xff]   ;;  %v1270_v13 = vld [vmem:[%s2123_s1 + $0x10] sm:$0xff]   ;;  %20 = vst.msk [vmem:[#allocation2 + $0x18] sm:$0xff] %vm16_vm0, %v1451_v48 }
   0x5   :  { %v1277_v11 = vld [vmem:[%s2124_s0 + $0x4] ss:$8 sps:$4 sm:$0xff]   ;;  %v1275_v18 = vld [vmem:[%s2124_s0] ss:$8 sps:$4 sm:$0xff]   ;;  %v1281_v20 = vld [vmem:[%s2124_s0 + $0x14] ss:$8 sps:$4 sm:$0xff]  }
   0x6   :  { %v1280_v12 = vld [vmem:[%s2124_s0 + $0x84] ss:$8 sps:$4 sm:$0xff]   ;;  %433 = vmatprep.mubr.bf16.mxu0 %v1277_v11  ;;  %v1278_v19 = vld [vmem:[%s2124_s0 + $0x80] ss:$8 sps:$4 sm:$0xff]   ;;  %v1284_v21 = vld [vmem:[%s2124_s0 + $0x94] ss:$8 sps:$4 sm:$0xff]  }
   0x7   :  { %1133 = vmatpush3.bf16.msra.mxu0 %v1262_v3  ;;  %1251 = vmatpush3.bf16.msra.mxu1 %v1262_v3  ;;  %v1271_v14 = vld [vmem:[%s2123_s1 + $0x48] sm:$0xff]   ;;  %v1273_v16 = vld [vmem:[%s2123_s1 + $0x40] sm:$0xff]   ;;  %v1283_v22 = vld [vmem:[%s2124_s0 + $0x10] ss:$8 sps:$4 sm:$0xff]   ;;  %21 = vst.msk [vmem:[#allocation2 + $0x20] sm:$0xff] %vm16_vm0, %v1451_v48 }
   0x8   :  { %1134 = vmatprep.subr.bf16.mxu0 %v1263_v4  ;;  %1244 = vmatprep.subr.bf16.mxu1 %v1263_v4  ;;  %v1272_v15 = vld [vmem:[%s2123_s1 + $0x8] sm:$0xff]   ;;  %v1274_v17 = vld [vmem:[%s2123_s1] sm:$0xff]   ;;  %v1286_v23 = vld [vmem:[%s2124_s0 + $0x90] ss:$8 sps:$4 sm:$0xff]   ;;  %22 = vst.msk [vmem:[#allocation2 + $0x28] sm:$0xff] %vm16_vm0, %v1451_v48 }
   0x9   :  { %497 = vmatprep.mubr.bf16.mxu1 %v1280_v12  ;;  %v1287_v24 = vld [vmem:[%s2124_s0 + $0x24] ss:$8 sps:$4 sm:$0xff]   ;;  %v1289_v26 = vld [vmem:[%s2124_s0 + $0x20] ss:$8 sps:$4 sm:$0xff]   ;;  %v1293_v28 = vld [vmem:[%s2124_s0 + $0x34] ss:$8 sps:$4 sm:$0xff]  }
   0xa   :  { %v1290_v25 = vld [vmem:[%s2124_s0 + $0xa4] ss:$8 sps:$4 sm:$0xff]   ;;  %v1292_v27 = vld [vmem:[%s2124_s0 + $0xa0] ss:$8 sps:$4 sm:$0xff]   ;;  %v1296_v29 = vld [vmem:[%s2124_s0 + $0xb4] ss:$8 sps:$4 sm:$0xff]  }
   0xb   :  { %1135 = vmatpush3.bf16.msra.mxu0 %v1264_v5  ;;  %1252 = vmatpush3.bf16.msra.mxu1 %v1264_v5  ;;  %v1295_v30 = vld [vmem:[%s2124_s0 + $0x30] ss:$8 sps:$4 sm:$0xff]   ;;  %v1299_v32 = vld [vmem:[%s2124_s0 + $0x44] ss:$8 sps:$4 sm:$0xff]   ;;  %v1301_v34 = vld [vmem:[%s2124_s0 + $0x40] ss:$8 sps:$4 sm:$0xff]  }
   0xc   :  { %1136 = vmatprep.subr.bf16.mxu0 %v1265_v6  ;;  %1245 = vmatprep.subr.bf16.mxu1 %v1265_v6  ;;  %v1298_v31 = vld [vmem:[%s2124_s0 + $0xb0] ss:$8 sps:$4 sm:$0xff]   ;;  %v1302_v33 = vld [vmem:[%s2124_s0 + $0xc4] ss:$8 sps:$4 sm:$0xff]   ;;  %v1304_v35 = vld [vmem:[%s2124_s0 + $0xc0] ss:$8 sps:$4 sm:$0xff]  }
   0xd   :  { %v1305_v36 = vld [vmem:[%s2124_s0 + $0x54] ss:$8 sps:$4 sm:$0xff]   ;;  %v1307_v38 = vld [vmem:[%s2124_s0 + $0x50] ss:$8 sps:$4 sm:$0xff]   ;;  %v1311_v40 = vld [vmem:[%s2124_s0 + $0x64] ss:$8 sps:$4 sm:$0xff]  }
   0xe   :  { %v1308_v37 = vld [vmem:[%s2124_s0 + $0xd4] ss:$8 sps:$4 sm:$0xff]   ;;  %v1310_v39 = vld [vmem:[%s2124_s0 + $0xd0] ss:$8 sps:$4 sm:$0xff]   ;;  %v1314_v41 = vld [vmem:[%s2124_s0 + $0xe4] ss:$8 sps:$4 sm:$0xff]  }
   0xf   :  { %1137 = vmatpush3.bf16.msra.mxu0 %v1266_v7  ;;  %1253 = vmatpush3.bf16.msra.mxu1 %v1266_v7  ;;  %v1313_v42 = vld [vmem:[%s2124_s0 + $0x60] ss:$8 sps:$4 sm:$0xff]   ;;  %v1317_v44 = vld [vmem:[%s2124_s0 + $0x74] ss:$8 sps:$4 sm:$0xff]   ;;  %v1319_v46 = vld [vmem:[%s2124_s0 + $0x70] ss:$8 sps:$4 sm:$0xff]  }
  0x10   :  { %1138 = vmatprep.subr.bf16.mxu0 %v1267_v8  ;;  %1246 = vmatprep.subr.bf16.mxu1 %v1267_v8  ;;  %v1316_v43 = vld [vmem:[%s2124_s0 + $0xe0] ss:$8 sps:$4 sm:$0xff]   ;;  %v1320_v45 = vld [vmem:[%s2124_s0 + $0xf4] ss:$8 sps:$4 sm:$0xff]   ;;  %v1322_v47 = vld [vmem:[%s2124_s0 + $0xf0] ss:$8 sps:$4 sm:$0xff]  }
  0x11   :  { %23 = vst.msk [vmem:[#allocation2 + $0x30] sm:$0xff] %vm16_vm0, %v1451_v48  ;;  %24 = vst.msk [vmem:[#allocation2 + $0x38] sm:$0xff] %vm16_vm0, %v1451_v48  ;;  %v49_v51 = vld [vmem:[#allocation2] sm:$0xff]  ;;  %v50_v61 = vld [vmem:[#allocation2 + $0x8] sm:$0xff] }
  0x12   :  { %25 = vst.msk [vmem:[#allocation2 + $0x40] sm:$0xff] %vm16_vm0, %v1451_v48  ;;  %26 = vst.msk [vmem:[#allocation2 + $0x48] sm:$0xff] %vm16_vm0, %v1451_v48  ;;  %v51_v7 = vld [vmem:[#allocation2 + $0x10] sm:$0xff] }
  0x13   :  { %1139 = vmatpush3.bf16.msra.mxu0 %v1268_v9  ;;  %1254 = vmatpush3.bf16.msra.mxu1 %v1268_v9  ;;  %27 = vst.msk [vmem:[#allocation2 + $0x50] sm:$0xff] %vm16_vm0, %v1451_v48  ;;  %28 = vst.msk [vmem:[#allocation2 + $0x58] sm:$0xff] %vm16_vm0, %v1451_v48 }
  0x14   :  { %1140 = vmatprep.subr.bf16.mxu0 %v1269_v10  ;;  %1247 = vmatprep.subr.bf16.mxu1 %v1269_v10  ;;  %29 = vst.msk [vmem:[#allocation2 + $0x60] sm:$0xff] %vm16_vm0, %v1451_v48  ;;  %30 = vst.msk [vmem:[#allocation2 + $0x68] sm:$0xff] %vm16_vm0, %v1451_v48 }
  0x15   :  { %31 = vst.msk [vmem:[#allocation2 + $0x70] sm:$0xff] %vm16_vm0, %v1451_v48  ;;  %32 = vst.msk [vmem:[#allocation2 + $0x78] sm:$0xff] %vm16_vm0, %v1451_v48 }
  0x16   :  { %33 = vst.msk [vmem:[#allocation2 + $0x80] sm:$0xff] %vm16_vm0, %v1451_v48  ;;  %34 = vst.msk [vmem:[#allocation2 + $0x88] sm:$0xff] %vm16_vm0, %v1451_v48 }
  0x17   :  { %1141 = vmatpush3.bf16.msra.mxu0 %v1270_v13  ;;  %1255 = vmatpush3.bf16.msra.mxu1 %v1270_v13  ;;  %35 = vst.msk [vmem:[#allocation2 + $0x90] sm:$0xff] %vm16_vm0, %v1451_v48  ;;  %36 = vst.msk [vmem:[#allocation2 + $0x98] sm:$0xff] %vm16_vm0, %v1451_v48 }
  0x18   :  { %1142 = vmatprep.subr.bf16.mxu0 %v1271_v14  ;;  %1248 = vmatprep.subr.bf16.mxu1 %v1271_v14  ;;  %37 = vst.msk [vmem:[#allocation2 + $0xa0] sm:$0xff] %vm16_vm0, %v1451_v48  ;;  %38 = vst.msk [vmem:[#allocation2 + $0xa8] sm:$0xff] %vm16_vm0, %v1451_v48 }
  0x19   :  { %39 = vst.msk [vmem:[#allocation2 + $0xb0] sm:$0xff] %vm16_vm0, %v1451_v48  ;;  %40 = vst.msk [vmem:[#allocation2 + $0xb8] sm:$0xff] %vm16_vm0, %v1451_v48 }
  0x1a   :  { %41 = vst.msk [vmem:[#allocation2 + $0xc0] sm:$0xff] %vm16_vm0, %v1451_v48  ;;  %42 = vst.msk [vmem:[#allocation2 + $0xc8] sm:$0xff] %vm16_vm0, %v1451_v48 }
  0x1b   :  { %1143 = vmatpush3.bf16.msra.mxu0 %v1272_v15  ;;  %1256 = vmatpush3.bf16.msra.mxu1 %v1272_v15  ;;  %43 = vst.msk [vmem:[#allocation2 + $0xd0] sm:$0xff] %vm16_vm0, %v1451_v48  ;;  %44 = vst.msk [vmem:[#allocation2 + $0xd8] sm:$0xff] %vm16_vm0, %v1451_v48 }
  0x1c   :  { %1144 = vmatprep.subr.bf16.mxu0 %v1273_v16  ;;  %1249 = vmatprep.subr.bf16.mxu1 %v1273_v16  ;;  %45 = vst.msk [vmem:[#allocation2 + $0xe0] sm:$0xff] %vm16_vm0, %v1451_v48  ;;  %46 = vst.msk [vmem:[#allocation2 + $0xe8] sm:$0xff] %vm16_vm0, %v1451_v48 }
  0x1d   :  { %47 = vst.msk [vmem:[#allocation2 + $0xf0] sm:$0xff] %vm16_vm0, %v1451_v48  ;;  %48 = vst.msk [vmem:[#allocation2 + $0xf8] sm:$0xff] %vm16_vm0, %v1451_v48  ;;  %v65_v53 = vld [vmem:[#allocation2 + $0x80] sm:$0xff]  ;;  %v66_v63 = vld [vmem:[#allocation2 + $0x88] sm:$0xff] }
  0x1e   :  { %v67_v9 = vld [vmem:[#allocation2 + $0x90] sm:$0xff] }
  0x1f   :  { %1145 = vmatpush3.bf16.msra.mxu0 %v1274_v17  ;;  %1257 = vmatpush3.bf16.msra.mxu1 %v1274_v17  ;;  %v52_v17 = vld [vmem:[#allocation2 + $0x18] sm:$0xff] }
  0x22   :  { %434 = vmatmul.mubr.bf16.vlgmr.msra.gmra.mxu0 %v1275_v18  ;;  %498 = vmatmul.mubr.bf16.vlgmr.msra.gmra.mxu1 %v1278_v19  ;;  %v68_v19 = vld [vmem:[#allocation2 + $0x98] sm:$0xff] }
  0x23   :  { %441 = vmatprep.mubr.bf16.mxu0 %v1281_v20  ;;  %505 = vmatprep.mubr.bf16.mxu1 %v1284_v21 }
  0x2a   :  { %442 = vmatmul.mubr.bf16.gmra.mxu0 %v1283_v22  ;;  %506 = vmatmul.mubr.bf16.gmra.mxu1 %v1286_v23 }
  0x2b   :  { %449 = vmatprep.mubr.bf16.mxu0 %v1287_v24  ;;  %513 = vmatprep.mubr.bf16.mxu1 %v1290_v25 }
  0x32   :  { %450 = vmatmul.mubr.bf16.gmra.mxu0 %v1289_v26  ;;  %514 = vmatmul.mubr.bf16.gmra.mxu1 %v1292_v27 }
  0x33   :  { %457 = vmatprep.mubr.bf16.mxu0 %v1293_v28  ;;  %521 = vmatprep.mubr.bf16.mxu1 %v1296_v29 }
  0x3a   :  { %458 = vmatmul.mubr.bf16.gmra.mxu0 %v1295_v30  ;;  %522 = vmatmul.mubr.bf16.gmra.mxu1 %v1298_v31  ;;  %v53_v30 = vld [vmem:[#allocation2 + $0x20] sm:$0xff] }
  0x3b   :  { %465 = vmatprep.mubr.bf16.mxu0 %v1299_v32  ;;  %529 = vmatprep.mubr.bf16.mxu1 %v1302_v33  ;;  %v69_v32 = vld [vmem:[#allocation2 + $0xa0] sm:$0xff] }
  0x42   :  { %466 = vmatmul.mubr.bf16.gmra.mxu0 %v1301_v34  ;;  %530 = vmatmul.mubr.bf16.gmra.mxu1 %v1304_v35 }
  0x43   :  { %473 = vmatprep.mubr.bf16.mxu0 %v1305_v36  ;;  %537 = vmatprep.mubr.bf16.mxu1 %v1308_v37 }
  0x4a   :  { %474 = vmatmul.mubr.bf16.gmra.mxu0 %v1307_v38  ;;  %538 = vmatmul.mubr.bf16.gmra.mxu1 %v1310_v39 }
  0x4b   :  { %481 = vmatprep.mubr.bf16.mxu0 %v1311_v40  ;;  %545 = vmatprep.mubr.bf16.mxu1 %v1314_v41 }
  0x52   :  { %482 = vmatmul.mubr.bf16.gmra.mxu0 %v1313_v42  ;;  %546 = vmatmul.mubr.bf16.gmra.mxu1 %v1316_v43 }
  0x53   :  { %489 = vmatprep.mubr.bf16.mxu0 %v1317_v44  ;;  %553 = vmatprep.mubr.bf16.mxu1 %v1320_v45  ;;  %v54_v44 = vld [vmem:[#allocation2 + $0x28] sm:$0xff] }
  0x5a   :  { %490 = vmatmul.mubr.bf16.gmra.mxu0 %v1319_v46  ;;  %554 = vmatmul.mubr.bf16.gmra.mxu1 %v1322_v47  ;;  %v70_v46 = vld [vmem:[#allocation2 + $0xa8] sm:$0xff] }
  0xe2   :  { %v1146_v49 = vpop.f32.mrf.mxu0  ;;  %v1194_v50 = vpop.f32.mrf.mxu1 }
  0xe4   :  { %v1147_v52 = vpop.f32.mrf.mxu0  ;;  %v1195_v54 = vpop.f32.mrf.mxu1 }
  0xe5   :  { %v1148_v55 = vadd.f32 %v1147_v52, %v1146_v49  ;;  %v1196_v56 = vadd.f32 %v1195_v54, %v1194_v50 }
  0xe6   :  { %v1149_v57 = vpop.f32.mrf.mxu0  ;;  %v1197_v58 = vpop.f32.mrf.mxu1 }
  0xe7   :  { %v562_v59 = vadd.f32 %v1148_v55, %v49_v51  ;;  %v578_v60 = vadd.f32 %v1196_v56, %v65_v53 }
  0xe8   :  { %v1150_v62 = vpop.f32.mrf.mxu0  ;;  %v1198_v0 = vpop.f32.mrf.mxu1 }
  0xe9   :  { %595 = vst.msk [vmem:[#allocation2] sm:$0xff] %vm16_vm0, %v562_v59  ;;  %611 = vst.msk [vmem:[#allocation2 + $0x80] sm:$0xff] %vm16_vm0, %v578_v60  ;;  %v1151_v1 = vadd.f32 %v1150_v62, %v1149_v57  ;;  %v1199_v2 = vadd.f32 %v1198_v0, %v1197_v58  ;;  %v55_v59 = vld [vmem:[#allocation2 + $0x30] sm:$0xff] }
  0xea   :  { %v1152_v3 = vpop.f32.mrf.mxu0  ;;  %v1200_v4 = vpop.f32.mrf.mxu1 }
  0xeb   :  { %v563_v5 = vadd.f32 %v1151_v1, %v50_v61  ;;  %v579_v6 = vadd.f32 %v1199_v2, %v66_v63  ;;  %v71_v61 = vld [vmem:[#allocation2 + $0xb0] sm:$0xff] }
  0xec   :  { %v1153_v8 = vpop.f32.mrf.mxu0  ;;  %v1201_v10 = vpop.f32.mrf.mxu1 }
  0xed   :  { %596 = vst.msk [vmem:[#allocation2 + $0x8] sm:$0xff] %vm16_vm0, %v563_v5  ;;  %612 = vst.msk [vmem:[#allocation2 + $0x88] sm:$0xff] %vm16_vm0, %v579_v6  ;;  %v1154_v11 = vadd.f32 %v1153_v8, %v1152_v3  ;;  %v1202_v12 = vadd.f32 %v1201_v10, %v1200_v4  ;;  %v56_v8 = vld [vmem:[#allocation2 + $0x38] sm:$0xff] }
  0xee   :  { %v1155_v13 = vpop.f32.mrf.mxu0  ;;  %v1203_v14 = vpop.f32.mrf.mxu1  ;;  %v72_v10 = vld [vmem:[#allocation2 + $0xb8] sm:$0xff] }
  0xef   :  { %v564_v15 = vadd.f32 %v1154_v11, %v51_v7  ;;  %v580_v16 = vadd.f32 %v1202_v12, %v67_v9 }
  0xf0   :  { %v1156_v18 = vpop.f32.mrf.mxu0  ;;  %v1204_v20 = vpop.f32.mrf.mxu1  ;;  %v1647_v21 = vld [vmem:[#allocation2] sm:$0xff] }
  0xf1   :  { %597 = vst.msk [vmem:[#allocation2 + $0x10] sm:$0xff] %vm16_vm0, %v564_v15  ;;  %613 = vst.msk [vmem:[#allocation2 + $0x90] sm:$0xff] %vm16_vm0, %v580_v16  ;;  %v1157_v22 = vadd.f32 %v1156_v18, %v1155_v13  ;;  %v1205_v23 = vadd.f32 %v1204_v20, %v1203_v14  ;;  %v662_v24 = vsel %vm16_vm0, %v1647_v21, -inf  ;;  %v1653_v27 = vld [vmem:[#allocation2 + $0x80] sm:$0xff] }
  0xf2   :  { %v1158_v25 = vpop.f32.mrf.mxu0  ;;  %663 = vmax.xlane.f32.xlu0 %v662_v24  ;;  %v1206_v26 = vpop.f32.mrf.mxu1  ;;  %v710_v38 = vsel %vm16_vm0, %v1653_v27, -inf  ;;  %v57_v24 = vld [vmem:[#allocation2 + $0x40] sm:$0xff] }
  0xf3   :  { %v565_v28 = vadd.f32 %v1157_v22, %v52_v17  ;;  %v581_v29 = vadd.f32 %v1205_v23, %v68_v19 }
  0xf4   :  { %v1159_v31 = vpop.f32.mrf.mxu0  ;;  %v1207_v33 = vpop.f32.mrf.mxu1  ;;  %v1655_v34 = vld [vmem:[#allocation2 + $0x88] sm:$0xff] }
  0xf5   :  { %598 = vst.msk [vmem:[#allocation2 + $0x18] sm:$0xff] %vm16_vm0, %v565_v28  ;;  %614 = vst.msk [vmem:[#allocation2 + $0x98] sm:$0xff] %vm16_vm0, %v581_v29  ;;  %v1160_v35 = vadd.f32 %v1159_v31, %v1158_v25  ;;  %v1208_v36 = vadd.f32 %v1207_v33, %v1206_v26  ;;  %v713_v37 = vsel %vm16_vm0, %v1655_v34, -inf  ;;  %v1663_v41 = vld [vmem:[#allocation2 + $0x8] sm:$0xff]  ;;  %v73_v26 = vld [vmem:[#allocation2 + $0xc0] sm:$0xff] }
  0xf6   :  { %714 = vmax.xlane.f32.xlu1 %v713_v37  ;;  %v1161_v39 = vpop.f32.mrf.mxu0  ;;  %711 = vmax.xlane.f32.xlu0 %v710_v38  ;;  %v1209_v40 = vpop.f32.mrf.mxu1  ;;  %v665_v53 = vsel %vm16_vm0, %v1663_v41, -inf }
  0xf7   :  { %v566_v42 = vadd.f32 %v1160_v35, %v53_v30  ;;  %v582_v43 = vadd.f32 %v1208_v36, %v69_v32 }
  0xf8   :  { %v1162_v45 = vpop.f32.mrf.mxu0  ;;  %v1210_v47 = vpop.f32.mrf.mxu1  ;;  %v1665_v48 = vld [vmem:[#allocation2 + $0x10] sm:$0xff] }
  0xf9   :  { %v1667_v49 = vld [vmem:[#allocation2 + $0x90] sm:$0xff]  ;;  %599 = vst.msk [vmem:[#allocation2 + $0x20] sm:$0xff] %vm16_vm0, %v566_v42  ;;  %615 = vst.msk [vmem:[#allocation2 + $0xa0] sm:$0xff] %vm16_vm0, %v582_v43  ;;  %v1163_v50 = vadd.f32 %v1162_v45, %v1161_v39  ;;  %v1211_v51 = vadd.f32 %v1210_v47, %v1209_v40  ;;  %v668_v52 = vsel %vm16_vm0, %v1665_v48, -inf  ;;  %v58_v39 = vld [vmem:[#allocation2 + $0x48] sm:$0xff] }
  0xfa   :  { %v1164_v54 = vpop.f32.mrf.mxu0  ;;  %669 = vmax.xlane.f32.xlu1 %v668_v52  ;;  %666 = vmax.xlane.f32.xlu0 %v665_v53  ;;  %v1212_v55 = vpop.f32.mrf.mxu1  ;;  %v716_v58 = vsel %vm16_vm0, %v1667_v49, -inf  ;;  %v74_v42 = vld [vmem:[#allocation2 + $0xc8] sm:$0xff] }
  0xfb   :  { %v567_v56 = vadd.f32 %v1163_v50, %v54_v44  ;;  %v583_v57 = vadd.f32 %v1211_v51, %v70_v46 }
  0xfc   :  { %v1165_v60 = vpop.f32.mrf.mxu0  ;;  %v1213_v62 = vpop.f32.mrf.mxu1  ;;  %v1677_v63 = vld [vmem:[#allocation2 + $0x18] sm:$0xff] }
  0xfd   :  { %600 = vst.msk [vmem:[#allocation2 + $0x28] sm:$0xff] %vm16_vm0, %v567_v56  ;;  %616 = vst.msk [vmem:[#allocation2 + $0xa8] sm:$0xff] %vm16_vm0, %v583_v57  ;;  %v1166_v0 = vadd.f32 %v1165_v60, %v1164_v54  ;;  %v1214_v1 = vadd.f32 %v1213_v62, %v1212_v55  ;;  %v671_v2 = vsel %vm16_vm0, %v1677_v63, -inf  ;;  %v1683_v5 = vld [vmem:[#allocation2 + $0x98] sm:$0xff]  ;;  %v59_v57 = vld [vmem:[#allocation2 + $0x50] sm:$0xff] }
  0xfe   :  { %v1167_v3 = vpop.f32.mrf.mxu0  ;;  %672 = vmax.xlane.f32.xlu1 %v671_v2  ;;  %717 = vmax.xlane.f32.xlu0 %v716_v58  ;;  %v1215_v4 = vpop.f32.mrf.mxu1  ;;  %v719_v16 = vsel %vm16_vm0, %v1683_v5, -inf }
  0xff   :  { %v568_v6 = vadd.f32 %v1166_v0, %v55_v59  ;;  %v584_v7 = vadd.f32 %v1214_v1, %v71_v61  ;;  %v75_v59 = vld [vmem:[#allocation2 + $0xd0] sm:$0xff] }
 0x100   :  { %v1168_v9 = vpop.f32.mrf.mxu0  ;;  %v1216_v11 = vpop.f32.mrf.mxu1  ;;  %v1685_v12 = vld [vmem:[#allocation2 + $0x20] sm:$0xff] }
 0x101   :  { %v1687_v13 = vld [vmem:[#allocation2 + $0xa0] sm:$0xff]  ;;  %601 = vst.msk [vmem:[#allocation2 + $0x30] sm:$0xff] %vm16_vm0, %v568_v6  ;;  %617 = vst.msk [vmem:[#allocation2 + $0xb0] sm:$0xff] %vm16_vm0, %v584_v7  ;;  %v1169_v14 = vadd.f32 %v1168_v9, %v1167_v3  ;;  %v1217_v15 = vadd.f32 %v1216_v11, %v1215_v4  ;;  %v674_v17 = vsel %vm16_vm0, %v1685_v12, -inf }
 0x102   :  { %v1170_v18 = vpop.f32.mrf.mxu0  ;;  %720 = vmax.xlane.f32.xlu1 %v719_v16  ;;  %675 = vmax.xlane.f32.xlu0 %v674_v17  ;;  %v1218_v19 = vpop.f32.mrf.mxu1  ;;  %v722_v23 = vsel %vm16_vm0, %v1687_v13, -inf }
 0x103   :  { %v569_v20 = vadd.f32 %v1169_v14, %v56_v8  ;;  %v585_v22 = vadd.f32 %v1217_v15, %v72_v10  ;;  %v60_v8 = vld [vmem:[#allocation2 + $0x58] sm:$0xff] }
 0x104   :  { %v1171_v25 = vpop.f32.mrf.mxu0  ;;  %v1219_v28 = vpop.f32.mrf.mxu1  ;;  %v1697_v29 = vld [vmem:[#allocation2 + $0x28] sm:$0xff]  ;;  %v76_v10 = vld [vmem:[#allocation2 + $0xd8] sm:$0xff] }
 0x105   :  { %602 = vst.msk [vmem:[#allocation2 + $0x38] sm:$0xff] %vm16_vm0, %v569_v20  ;;  %618 = vst.msk [vmem:[#allocation2 + $0xb8] sm:$0xff] %vm16_vm0, %v585_v22  ;;  %v1172_v30 = vadd.f32 %v1171_v25, %v1170_v18  ;;  %v1220_v31 = vadd.f32 %v1219_v28, %v1218_v19  ;;  %v677_v32 = vsel %vm16_vm0, %v1697_v29, -inf  ;;  %v1703_v36 = vld [vmem:[#allocation2 + $0xa8] sm:$0xff] }
 0x106   :  { %v1173_v33 = vpop.f32.mrf.mxu0  ;;  %678 = vmax.xlane.f32.xlu1 %v677_v32  ;;  %723 = vmax.xlane.f32.xlu0 %v722_v23  ;;  %v1221_v35 = vpop.f32.mrf.mxu1  ;;  %v725_v50 = vsel %vm16_vm0, %v1703_v36, -inf }
 0x107   :  { %v570_v37 = vadd.f32 %v1172_v30, %v57_v24  ;;  %v586_v38 = vadd.f32 %v1220_v31, %v73_v26  ;;  %v61_v26 = vld [vmem:[#allocation2 + $0x60] sm:$0xff] }
 0x108   :  { %v1174_v40 = vpop.f32.mrf.mxu0  ;;  %v1222_v43 = vpop.f32.mrf.mxu1  ;;  %v1705_v44 = vld [vmem:[#allocation2 + $0x30] sm:$0xff]  ;;  %v77_v30 = vld [vmem:[#allocation2 + $0xe0] sm:$0xff] }
 0x109   :  { %v1707_v45 = vld [vmem:[#allocation2 + $0xb0] sm:$0xff]  ;;  %603 = vst.msk [vmem:[#allocation2 + $0x40] sm:$0xff] %vm16_vm0, %v570_v37  ;;  %619 = vst.msk [vmem:[#allocation2 + $0xc0] sm:$0xff] %vm16_vm0, %v586_v38  ;;  %v1175_v46 = vadd.f32 %v1174_v40, %v1173_v33  ;;  %v1223_v47 = vadd.f32 %v1222_v43, %v1221_v35  ;;  %v680_v51 = vsel %vm16_vm0, %v1705_v44, -inf }
 0x10a   :  { %v1176_v52 = vpop.f32.mrf.mxu0  ;;  %726 = vmax.xlane.f32.xlu1 %v725_v50  ;;  %681 = vmax.xlane.f32.xlu0 %v680_v51  ;;  %v1224_v53 = vpop.f32.mrf.mxu1  ;;  %v728_v56 = vsel %vm16_vm0, %v1707_v45, -inf  ;;  %v78_v50 = vld [vmem:[#allocation2 + $0xe8] sm:$0xff] }
 0x10b   :  { %v571_v54 = vadd.f32 %v1175_v46, %v58_v39  ;;  %v587_v55 = vadd.f32 %v1223_v47, %v74_v42  ;;  %v62_v46 = vld [vmem:[#allocation2 + $0x68] sm:$0xff] }
 0x10c   :  { %v1177_v58 = vpop.f32.mrf.mxu0  ;;  %v1225_v60 = vpop.f32.mrf.mxu1  ;;  %v1717_v61 = vld [vmem:[#allocation2 + $0x38] sm:$0xff] }
 0x10d   :  { %604 = vst.msk [vmem:[#allocation2 + $0x48] sm:$0xff] %vm16_vm0, %v571_v54  ;;  %620 = vst.msk [vmem:[#allocation2 + $0xc8] sm:$0xff] %vm16_vm0, %v587_v55  ;;  %v1178_v62 = vadd.f32 %v1177_v58, %v1176_v52  ;;  %v1226_v0 = vadd.f32 %v1225_v60, %v1224_v53  ;;  %v683_v1 = vsel %vm16_vm0, %v1717_v61, -inf  ;;  %v1723_v4 = vld [vmem:[#allocation2 + $0xb8] sm:$0xff] }
 0x10e   :  { %v1179_v2 = vpop.f32.mrf.mxu0  ;;  %684 = vmax.xlane.f32.xlu1 %v683_v1  ;;  %729 = vmax.xlane.f32.xlu0 %v728_v56  ;;  %v1227_v3 = vpop.f32.mrf.mxu1  ;;  %v731_v18 = vsel %vm16_vm0, %v1723_v4, -inf  ;;  %v63_v1 = vld [vmem:[#allocation2 + $0x70] sm:$0xff] }
 0x10f   :  { %v572_v6 = vadd.f32 %v1178_v62, %v59_v57  ;;  %v588_v7 = vadd.f32 %v1226_v0, %v75_v59 }
 0x110   :  { %v1180_v9 = vpop.f32.mrf.mxu0  ;;  %v1228_v11 = vpop.f32.mrf.mxu1  ;;  %v1725_v14 = vld [vmem:[#allocation2 + $0x40] sm:$0xff] }
 0x111   :  { %v1727_v15 = vld [vmem:[#allocation2 + $0xc0] sm:$0xff]  ;;  %605 = vst.msk [vmem:[#allocation2 + $0x50] sm:$0xff] %vm16_vm0, %v572_v6  ;;  %621 = vst.msk [vmem:[#allocation2 + $0xd0] sm:$0xff] %vm16_vm0, %v588_v7  ;;  %v1181_v16 = vadd.f32 %v1180_v9, %v1179_v2  ;;  %v1229_v17 = vadd.f32 %v1228_v11, %v1227_v3  ;;  %v686_v19 = vsel %vm16_vm0, %v1725_v14, -inf  ;;  %v79_v3 = vld [vmem:[#allocation2 + $0xf0] sm:$0xff] }
 0x112   :  { %v1182_v20 = vpop.f32.mrf.mxu0  ;;  %732 = vmax.xlane.f32.xlu1 %v731_v18  ;;  %687 = vmax.xlane.f32.xlu0 %v686_v19  ;;  %v1230_v22 = vpop.f32.mrf.mxu1  ;;  %v734_v25 = vsel %vm16_vm0, %v1727_v15, -inf }
 0x113   :  { %v573_v23 = vadd.f32 %v1181_v16, %v60_v8  ;;  %v589_v24 = vadd.f32 %v1229_v17, %v76_v10 }
 0x114   :  { %v1183_v28 = vpop.f32.mrf.mxu0  ;;  %v1231_v31 = vpop.f32.mrf.mxu1  ;;  %v1737_v32 = vld [vmem:[#allocation2 + $0x48] sm:$0xff] }
 0x115   :  { %606 = vst.msk [vmem:[#allocation2 + $0x58] sm:$0xff] %vm16_vm0, %v573_v23  ;;  %622 = vst.msk [vmem:[#allocation2 + $0xd8] sm:$0xff] %vm16_vm0, %v589_v24  ;;  %v1184_v33 = vadd.f32 %v1183_v28, %v1182_v20  ;;  %v1232_v35 = vadd.f32 %v1231_v31, %v1230_v22  ;;  %v689_v37 = vsel %vm16_vm0, %v1737_v32, -inf  ;;  %v1743_v40 = vld [vmem:[#allocation2 + $0xc8] sm:$0xff]  ;;  %v64_v20 = vld [vmem:[#allocation2 + $0x78] sm:$0xff] }
 0x116   :  { %v1185_v38 = vpop.f32.mrf.mxu0  ;;  %690 = vmax.xlane.f32.xlu1 %v689_v37  ;;  %735 = vmax.xlane.f32.xlu0 %v734_v25  ;;  %v1233_v39 = vpop.f32.mrf.mxu1  ;;  %v737_v56 = vsel %vm16_vm0, %v1743_v40, -inf  ;;  %v80_v23 = vld [vmem:[#allocation2 + $0xf8] sm:$0xff] }
 0x117   :  { %v574_v42 = vadd.f32 %v1184_v33, %v61_v26  ;;  %v590_v43 = vadd.f32 %v1232_v35, %v77_v30 }
 0x118   :  { %v1186_v47 = vpop.f32.mrf.mxu0  ;;  %v1234_v51 = vpop.f32.mrf.mxu1  ;;  %v1745_v52 = vld [vmem:[#allocation2 + $0x50] sm:$0xff] }
 0x119   :  { %v1747_v53 = vld [vmem:[#allocation2 + $0xd0] sm:$0xff]  ;;  %607 = vst.msk [vmem:[#allocation2 + $0x60] sm:$0xff] %vm16_vm0, %v574_v42  ;;  %623 = vst.msk [vmem:[#allocation2 + $0xe0] sm:$0xff] %vm16_vm0, %v590_v43  ;;  %v1187_v54 = vadd.f32 %v1186_v47, %v1185_v38  ;;  %v1235_v55 = vadd.f32 %v1234_v51, %v1233_v39  ;;  %v692_v57 = vsel %vm16_vm0, %v1745_v52, -inf }
 0x11a   :  { %v1188_v58 = vpop.f32.mrf.mxu0  ;;  %738 = vmax.xlane.f32.xlu1 %v737_v56  ;;  %693 = vmax.xlane.f32.xlu0 %v692_v57  ;;  %v1236_v59 = vpop.f32.mrf.mxu1  ;;  %v740_v0 = vsel %vm16_vm0, %v1747_v53, -inf }
 0x11b   :  { %v575_v60 = vadd.f32 %v1187_v54, %v62_v46  ;;  %v591_v62 = vadd.f32 %v1235_v55, %v78_v50 }
 0x11c   :  { %v1189_v2 = vpop.f32.mrf.mxu0  ;;  %v1237_v6 = vpop.f32.mrf.mxu1  ;;  %v1757_v7 = vld [vmem:[#allocation2 + $0x58] sm:$0xff] }
 0x11d   :  { %608 = vst.msk [vmem:[#allocation2 + $0x68] sm:$0xff] %vm16_vm0, %v575_v60  ;;  %624 = vst.msk [vmem:[#allocation2 + $0xe8] sm:$0xff] %vm16_vm0, %v591_v62  ;;  %v1190_v8 = vadd.f32 %v1189_v2, %v1188_v58  ;;  %v1238_v9 = vadd.f32 %v1237_v6, %v1236_v59  ;;  %v695_v10 = vsel %vm16_vm0, %v1757_v7, -inf  ;;  %v1763_v17 = vld [vmem:[#allocation2 + $0xd8] sm:$0xff] }
 0x11e   :  { %v1191_v11 = vpop.f32.mrf.mxu0  ;;  %696 = vmax.xlane.f32.xlu1 %v695_v10  ;;  %741 = vmax.xlane.f32.xlu0 %v740_v0  ;;  %v1239_v16 = vpop.f32.mrf.mxu1  ;;  %v743_v31 = vsel %vm16_vm0, %v1763_v17, -inf }
 0x11f   :  { %v576_v18 = vadd.f32 %v1190_v8, %v63_v1  ;;  %v592_v19 = vadd.f32 %v1238_v9, %v79_v3 }
 0x120   :  { %v1192_v22 = vpop.f32.mrf.mxu0  ;;  %v1240_v24 = vpop.f32.mrf.mxu1  ;;  %v1765_v25 = vld [vmem:[#allocation2 + $0x60] sm:$0xff] }
 0x121   :  { %v1767_v26 = vld [vmem:[#allocation2 + $0xe0] sm:$0xff]  ;;  %609 = vst.msk [vmem:[#allocation2 + $0x70] sm:$0xff] %vm16_vm0, %v576_v18  ;;  %625 = vst.msk [vmem:[#allocation2 + $0xf0] sm:$0xff] %vm16_vm0, %v592_v19  ;;  %v1193_v28 = vadd.f32 %v1192_v22, %v1191_v11  ;;  %v1241_v30 = vadd.f32 %v1240_v24, %v1239_v16  ;;  %v698_v33 = vsel %vm16_vm0, %v1765_v25, -inf }
 0x122   :  { %744 = vmax.xlane.f32.xlu1 %v743_v31  ;;  %699 = vmax.xlane.f32.xlu0 %v698_v33  ;;  %v746_v38 = vsel %vm16_vm0, %v1767_v26, -inf }
 0x123   :  { %v577_v35 = vadd.f32 %v1193_v28, %v64_v20  ;;  %v593_v37 = vadd.f32 %v1241_v30, %v80_v23 }
 0x124   :  { %v1777_v39 = vld [vmem:[#allocation2 + $0x68] sm:$0xff] }
 0x125   :  { %610 = vst.msk [vmem:[#allocation2 + $0x78] sm:$0xff] %vm16_vm0, %v577_v35  ;;  %626 = vst.msk [vmem:[#allocation2 + $0xf8] sm:$0xff] %vm16_vm0, %v593_v37  ;;  %v701_v42 = vsel %vm16_vm0, %v1777_v39, -inf  ;;  %v1783_v43 = vld [vmem:[#allocation2 + $0xe8] sm:$0xff] }
 0x126   :  { %702 = vmax.xlane.f32.xlu1 %v701_v42  ;;  %747 = vmax.xlane.f32.xlu0 %v746_v38  ;;  %v749_v50 = vsel %vm16_vm0, %v1783_v43, -inf }
 0x128   :  { %v1785_v46 = vld [vmem:[#allocation2 + $0x70] sm:$0xff] }
 0x129   :  { %v1787_v47 = vld [vmem:[#allocation2 + $0xf0] sm:$0xff]  ;;  %v704_v51 = vsel %vm16_vm0, %v1785_v46, -inf }
 0x12a   :  { %750 = vmax.xlane.f32.xlu1 %v749_v50  ;;  %705 = vmax.xlane.f32.xlu0 %v704_v51  ;;  %v752_v54 = vsel %vm16_vm0, %v1787_v47, -inf }
 0x12c   :  { %v1795_v55 = vld [vmem:[#allocation2 + $0x78] sm:$0xff] }
 0x12d   :  { %v707_v56 = vsel %vm16_vm0, %v1795_v55, -inf  ;;  %v1799_v57 = vld [vmem:[#allocation2 + $0xf8] sm:$0xff] }
 0x12e   :  { %708 = vmax.xlane.f32.xlu1 %v707_v56  ;;  %753 = vmax.xlane.f32.xlu0 %v752_v54  ;;  %v755_v58 = vsel %vm16_vm0, %v1799_v57, -inf }
 0x132   :  { %756 = vmax.xlane.f32.xlu1 %v755_v58 }
 0x17b   :  { %v664_v59 = vpop.xlane.xlu0 %663 }
 0x17c   :  { %v1804_v60 = vsub.f32 %v1647_v21, %v664_v59 }
 0x17e   :  { %v790_v62 = vmul.f32 1.442695, %v1804_v60 }
 0x17f   :  { %v715_v0 = vpop.xlane.xlu1 %714  ;;  %v712_v1 = vpop.xlane.xlu0 %711 }
 0x180   :  { %1323 = vpow2.f32 %v790_v62  ;;  %v1808_v2 = vsub.f32 %v1653_v27, %v712_v1  ;;  %v1812_v6 = vsub.f32 %v1655_v34, %v715_v0 }
 0x182   :  { %v822_v3 = vmul.f32 1.442695, %v1808_v2  ;;  %v824_v27 = vmul.f32 1.442695, %v1812_v6 }
 0x183   :  { %v670_v8 = vpop.xlane.xlu1 %669  ;;  %v667_v9 = vpop.xlane.xlu0 %666 }
 0x184   :  { %v1815_v10 = vsub.f32 %v1665_v48, %v670_v8  ;;  %v1818_v21 = vsub.f32 %v1663_v41, %v667_v9  ;;  %1325 = vpow2.f32 %v822_v3 }
 0x186   :  { %v794_v11 = vmul.f32 1.442695, %v1815_v10  ;;  %v792_v16 = vmul.f32 1.442695, %v1818_v21 }
 0x187   :  { %v673_v18 = vpop.xlane.xlu1 %672  ;;  %v718_v19 = vpop.xlane.xlu0 %717 }
 0x188   :  { %1327 = vpow2.f32 %v794_v11  ;;  %v1824_v34 = vsub.f32 %v1677_v63, %v673_v18  ;;  %v1827_v20 = vsub.f32 %v1667_v49, %v718_v19 }
 0x189   :  { %1329 = vpow2.f32 %v792_v16 }
 0x18a   :  { %v826_v41 = vmul.f32 1.442695, %v1827_v20  ;;  %1331 = vpow2.f32 %v824_v27  ;;  %v796_v48 = vmul.f32 1.442695, %v1824_v34 }
 0x18b   :  { %v721_v22 = vpop.xlane.xlu1 %720  ;;  %v676_v23 = vpop.xlane.xlu0 %675 }
 0x18c   :  { %v1832_v24 = vsub.f32 %v1683_v5, %v721_v22  ;;  %v1835_v28 = vsub.f32 %v1685_v12, %v676_v23  ;;  %1333 = vpow2.f32 %v826_v41 }
 0x18d   :  { %v1324_v30 = vpop.eup %1323  ;;  %1335 = vpow2.f32 %v796_v48 }
 0x18e   :  { %v798_v63 = vmul.f32 1.442695, %v1835_v28  ;;  %v854_v49 = vsel %vm16_vm0, %v1324_v30, 0.0  ;;  %v828_v31 = vmul.f32 1.442695, %v1832_v24 }
 0x18f   :  { %v679_v33 = vpop.xlane.xlu1 %678  ;;  %855 = vadd.xlane.f32.xlu0 %v854_v49  ;;  %v724_v35 = vpop.xlane.xlu0 %723 }
 0x190   :  { %v1841_v37 = vsub.f32 %v1697_v29, %v679_v33  ;;  %v1844_v5 = vsub.f32 %v1687_v13, %v724_v35  ;;  %1337 = vpow2.f32 %v798_v63 }
 0x191   :  { %v1326_v12 = vpop.eup %1325  ;;  %1339 = vpow2.f32 %v828_v31 }
 0x192   :  { %v830_v38 = vmul.f32 1.442695, %v1844_v5  ;;  %v800_v42 = vmul.f32 1.442695, %v1841_v37  ;;  %v902_v51 = vsel %vm16_vm0, %v1326_v12, 0.0 }
 0x193   :  { %v727_v50 = vpop.xlane.xlu1 %726  ;;  %v682_v54 = vpop.xlane.xlu0 %681  ;;  %903 = vadd.xlane.f32.xlu0 %v902_v51 }
 0x194   :  { %v1850_v56 = vsub.f32 %v1703_v36, %v727_v50  ;;  %v1853_v29 = vsub.f32 %v1705_v44, %v682_v54  ;;  %1341 = vpow2.f32 %v830_v38 }
 0x195   :  { %v1328_v13 = vpop.eup %1327  ;;  %1343 = vpow2.f32 %v800_v42 }
 0x196   :  { %v1330_v58 = vpop.eup %1329  ;;  %v802_v59 = vmul.f32 1.442695, %v1853_v29  ;;  %v860_v62 = vsel %vm16_vm0, %v1328_v13, 0.0  ;;  %v832_v0 = vmul.f32 1.442695, %v1850_v56 }
 0x197   :  { %v685_v1 = vpop.xlane.xlu1 %684  ;;  %v857_v3 = vsel %vm16_vm0, %v1330_v58, 0.0  ;;  %v730_v8 = vpop.xlane.xlu0 %729  ;;  %861 = vadd.xlane.f32.xlu0 %v860_v62 }
 0x198   :  { %v1332_v36 = vpop.eup %1331  ;;  %v1860_v9 = vsub.f32 %v1717_v61, %v685_v1  ;;  %858 = vadd.xlane.f32.xlu1 %v857_v3  ;;  %v1863_v44 = vsub.f32 %v1707_v45, %v730_v8  ;;  %1345 = vpow2.f32 %v802_v59 }
 0x199   :  { %v1334_v11 = vpop.eup %1333  ;;  %1347 = vpow2.f32 %v832_v0  ;;  %v905_v19 = vsel %vm16_vm0, %v1332_v36, 0.0 }
 0x19a   :  { %v834_v16 = vmul.f32 1.442695, %v1863_v44  ;;  %v804_v27 = vmul.f32 1.442695, %v1860_v9  ;;  %v908_v41 = vsel %vm16_vm0, %v1334_v11, 0.0  ;;  %v1336_v61 = vpop.eup %1335 }
 0x19b   :  { %v733_v18 = vpop.xlane.xlu1 %732  ;;  %v688_v48 = vpop.xlane.xlu0 %687  ;;  %909 = vadd.xlane.f32.xlu0 %v908_v41  ;;  %v863_v31 = vsel %vm16_vm0, %v1336_v61, 0.0 }
 0x19c   :  { %v1870_v22 = vsub.f32 %v1723_v4, %v733_v18  ;;  %906 = vadd.xlane.f32.xlu1 %v905_v19  ;;  %v1873_v45 = vsub.f32 %v1725_v14, %v688_v48  ;;  %1349 = vpow2.f32 %v834_v16 }
 0x19d   :  { %v1338_v23 = vpop.eup %1337  ;;  %1351 = vpow2.f32 %v804_v27 }
 0x19e   :  { %v806_v30 = vmul.f32 1.442695, %v1873_v45  ;;  %v836_v63 = vmul.f32 1.442695, %v1870_v22  ;;  %v866_v33 = vsel %vm16_vm0, %v1338_v23, 0.0  ;;  %v1340_v4 = vpop.eup %1339 }
 0x19f   :  { %v691_v49 = vpop.xlane.xlu1 %690  ;;  %v736_v35 = vpop.xlane.xlu0 %735  ;;  %867 = vadd.xlane.f32.xlu0 %v866_v33  ;;  %v911_v54 = vsel %vm16_vm0, %v1340_v4, 0.0 }
 0x1a0   :  { %v1880_v12 = vsub.f32 %v1737_v32, %v691_v49  ;;  %864 = vadd.xlane.f32.xlu1 %v863_v31  ;;  %v1883_v14 = vsub.f32 %v1727_v15, %v736_v35  ;;  %1353 = vpow2.f32 %v806_v30 }
 0x1a1   :  { %v1342_v38 = vpop.eup %1341  ;;  %1355 = vpow2.f32 %v836_v63 }
 0x1a2   :  { %v838_v42 = vmul.f32 1.442695, %v1883_v14  ;;  %v808_v50 = vmul.f32 1.442695, %v1880_v12  ;;  %v914_v13 = vsel %vm16_vm0, %v1342_v38, 0.0  ;;  %v1344_v32 = vpop.eup %1343 }
 0x1a3   :  { %v739_v51 = vpop.xlane.xlu1 %738  ;;  %v694_v58 = vpop.xlane.xlu0 %693  ;;  %915 = vadd.xlane.f32.xlu0 %v914_v13  ;;  %v869_v8 = vsel %vm16_vm0, %v1344_v32, 0.0 }
 0x1a4   :  { %v1890_v59 = vsub.f32 %v1743_v40, %v739_v51  ;;  %912 = vadd.xlane.f32.xlu1 %v911_v54  ;;  %v1893_v15 = vsub.f32 %v1745_v52, %v694_v58  ;;  %1357 = vpow2.f32 %v838_v42 }
 0x1a5   :  { %v1346_v62 = vpop.eup %1345  ;;  %1359 = vpow2.f32 %v808_v50 }
 0x1a6   :  { %v810_v0 = vmul.f32 1.442695, %v1893_v15  ;;  %v840_v1 = vmul.f32 1.442695, %v1890_v59  ;;  %v872_v36 = vsel %vm16_vm0, %v1346_v62, 0.0  ;;  %v1348_v40 = vpop.eup %1347 }
 0x1a7   :  { %v697_v3 = vpop.xlane.xlu1 %696  ;;  %v742_v11 = vpop.xlane.xlu0 %741  ;;  %873 = vadd.xlane.f32.xlu0 %v872_v36  ;;  %v917_v48 = vsel %vm16_vm0, %v1348_v40, 0.0 }
 0x1a8   :  { %v1900_v16 = vsub.f32 %v1757_v7, %v697_v3  ;;  %870 = vadd.xlane.f32.xlu1 %v869_v8  ;;  %v1903_v52 = vsub.f32 %v1747_v53, %v742_v11  ;;  %1361 = vpow2.f32 %v810_v0 }
 0x1a9   :  { %v1350_v27 = vpop.eup %1349  ;;  %1363 = vpow2.f32 %v840_v1 }
 0x1aa   :  { %v842_v18 = vmul.f32 1.442695, %v1903_v52  ;;  %v812_v19 = vmul.f32 1.442695, %v1900_v16  ;;  %v920_v61 = vsel %vm16_vm0, %v1350_v27, 0.0  ;;  %v1352_v7 = vpop.eup %1351 }
 0x1ab   :  { %v745_v41 = vpop.xlane.xlu1 %744  ;;  %v700_v23 = vpop.xlane.xlu0 %699  ;;  %921 = vadd.xlane.f32.xlu0 %v920_v61  ;;  %v875_v35 = vsel %vm16_vm0, %v1352_v7, 0.0 }
 0x1ac   :  { %v1910_v30 = vsub.f32 %v1763_v17, %v745_v41  ;;  %918 = vadd.xlane.f32.xlu1 %v917_v48  ;;  %v1913_v53 = vsub.f32 %v1765_v25, %v700_v23  ;;  %1365 = vpow2.f32 %v842_v18 }
 0x1ad   :  { %v1354_v63 = vpop.eup %1353  ;;  %1367 = vpow2.f32 %v812_v19 }
 0x1ae   :  { %v814_v49 = vmul.f32 1.442695, %v1913_v53  ;;  %v844_v31 = vmul.f32 1.442695, %v1910_v30  ;;  %v878_v4 = vsel %vm16_vm0, %v1354_v63, 0.0  ;;  %v1356_v17 = vpop.eup %1355 }
 0x1af   :  { %v703_v33 = vpop.xlane.xlu1 %702  ;;  %v748_v38 = vpop.xlane.xlu0 %747  ;;  %879 = vadd.xlane.f32.xlu0 %v878_v4  ;;  %v923_v58 = vsel %vm16_vm0, %v1356_v17, 0.0 }
 0x1b0   :  { %v1920_v42 = vsub.f32 %v1777_v39, %v703_v33  ;;  %876 = vadd.xlane.f32.xlu1 %v875_v35  ;;  %v1923_v25 = vsub.f32 %v1767_v26, %v748_v38  ;;  %1369 = vpow2.f32 %v814_v49 }
 0x1b1   :  { %v1358_v50 = vpop.eup %1357  ;;  %1371 = vpow2.f32 %v844_v31 }
 0x1b2   :  { %v846_v51 = vmul.f32 1.442695, %v1923_v25  ;;  %v816_v54 = vmul.f32 1.442695, %v1920_v42  ;;  %v926_v32 = vsel %vm16_vm0, %v1358_v50, 0.0  ;;  %v1360_v39 = vpop.eup %1359 }
 0x1b3   :  { %v751_v13 = vpop.xlane.xlu1 %750  ;;  %v706_v62 = vpop.xlane.xlu0 %705  ;;  %927 = vadd.xlane.f32.xlu0 %v926_v32  ;;  %v881_v11 = vsel %vm16_vm0, %v1360_v39, 0.0 }
 0x1b4   :  { %v1930_v0 = vsub.f32 %v1783_v43, %v751_v13  ;;  %924 = vadd.xlane.f32.xlu1 %v923_v58  ;;  %v1933_v26 = vsub.f32 %v1785_v46, %v706_v62  ;;  %1373 = vpow2.f32 %v846_v51 }
 0x1b5   :  { %v1362_v1 = vpop.eup %1361  ;;  %1375 = vpow2.f32 %v816_v54 }
 0x1b6   :  { %v818_v3 = vmul.f32 1.442695, %v1933_v26  ;;  %v848_v8 = vmul.f32 1.442695, %v1930_v0  ;;  %v884_v40 = vsel %vm16_vm0, %v1362_v1, 0.0  ;;  %v1364_v43 = vpop.eup %1363 }
 0x1b7   :  { %v709_v36 = vpop.xlane.xlu1 %708  ;;  %v754_v27 = vpop.xlane.xlu0 %753  ;;  %885 = vadd.xlane.f32.xlu0 %v884_v40  ;;  %v929_v23 = vsel %vm16_vm0, %v1364_v43, 0.0 }
 0x1b8   :  { %v1940_v18 = vsub.f32 %v1795_v55, %v709_v36  ;;  %882 = vadd.xlane.f32.xlu1 %v881_v11  ;;  %v1943_v46 = vsub.f32 %v1787_v47, %v754_v27  ;;  %1377 = vpow2.f32 %v818_v3 }
 0x1b9   :  { %v1366_v19 = vpop.eup %1365  ;;  %1379 = vpow2.f32 %v848_v8 }
 0x1ba   :  { %v850_v41 = vmul.f32 1.442695, %v1943_v46  ;;  %v820_v48 = vmul.f32 1.442695, %v1940_v18  ;;  %v932_v7 = vsel %vm16_vm0, %v1366_v19, 0.0  ;;  %v1368_v63 = vpop.eup %1367 }
 0x1bb   :  { %v757_v61 = vpop.xlane.xlu1 %756  ;;  %933 = vadd.xlane.f32.xlu0 %v932_v7  ;;  %v887_v31 = vsel %vm16_vm0, %v1368_v63, 0.0 }
 0x1bc   :  { %v1950_v55 = vsub.f32 %v1799_v57, %v757_v61  ;;  %930 = vadd.xlane.f32.xlu1 %v929_v23  ;;  %1381 = vpow2.f32 %v850_v41 }
 0x1bd   :  { %v1370_v47 = vpop.eup %1369  ;;  %1383 = vpow2.f32 %v820_v48 }
 0x1be   :  { %v852_v49 = vmul.f32 1.442695, %v1950_v55  ;;  %v890_v33 = vsel %vm16_vm0, %v1370_v47, 0.0  ;;  %v1372_v35 = vpop.eup %1371 }
 0x1bf   :  { %891 = vadd.xlane.f32.xlu0 %v890_v33  ;;  %v935_v38 = vsel %vm16_vm0, %v1372_v35, 0.0 }
 0x1c0   :  { %888 = vadd.xlane.f32.xlu1 %v887_v31  ;;  %1385 = vpow2.f32 %v852_v49 }
 0x1c1   :  { %v1374_v4 = vpop.eup %1373 }
 0x1c2   :  { %v938_v57 = vsel %vm16_vm0, %v1374_v4, 0.0  ;;  %v1376_v17 = vpop.eup %1375 }
 0x1c3   :  { %939 = vadd.xlane.f32.xlu0 %v938_v57  ;;  %v893_v51 = vsel %vm16_vm0, %v1376_v17, 0.0 }
 0x1c4   :  { %936 = vadd.xlane.f32.xlu1 %v935_v38 }
 0x1c5   :  { %v1378_v50 = vpop.eup %1377 }
 0x1c6   :  { %v896_v54 = vsel %vm16_vm0, %v1378_v50, 0.0  ;;  %v1380_v13 = vpop.eup %1379 }
 0x1c7   :  { %897 = vadd.xlane.f32.xlu0 %v896_v54  ;;  %v941_v32 = vsel %vm16_vm0, %v1380_v13, 0.0 }
 0x1c8   :  { %894 = vadd.xlane.f32.xlu1 %v893_v51 }
 0x1c9   :  { %v1382_v58 = vpop.eup %1381 }
 0x1ca   :  { %v944_v62 = vsel %vm16_vm0, %v1382_v58, 0.0  ;;  %v1384_v39 = vpop.eup %1383 }
 0x1cb   :  { %945 = vadd.xlane.f32.xlu0 %v944_v62  ;;  %v899_v1 = vsel %vm16_vm0, %v1384_v39, 0.0 }
 0x1cc   :  { %942 = vadd.xlane.f32.xlu1 %v941_v32 }
 0x1cd   :  { %v1386_v3 = vpop.eup %1385 }
 0x1ce   :  { %v947_v8 = vsel %vm16_vm0, %v1386_v3, 0.0 }
 0x1d0   :  { %900 = vadd.xlane.f32.xlu1 %v899_v1 }
 0x1d4   :  { %948 = vadd.xlane.f32.xlu1 %v947_v8 }
 0x218   :  { %v856_v36 = vpop.xlane.xlu0 %855 }
 0x219   :  { %1387 = vlog2.f32 %v856_v36 }
 0x21c   :  { %v904_v11 = vpop.xlane.xlu0 %903 }
 0x21d   :  { %1389 = vlog2.f32 %v904_v11 }
 0x220   :  { %v862_v27 = vpop.xlane.xlu0 %861 }
 0x221   :  { %v859_v40 = vpop.xlane.xlu1 %858 }
 0x222   :  { %1391 = vlog2.f32 %v859_v40 }
 0x223   :  { %1393 = vlog2.f32 %v862_v27 }
 0x224   :  { %v910_v19 = vpop.xlane.xlu0 %909 }
 0x225   :  { %v907_v43 = vpop.xlane.xlu1 %906 }
 0x226   :  { %v1388_v41 = vpop.eup %1387  ;;  %1395 = vlog2.f32 %v907_v43 }
 0x227   :  { %v951_v48 = vmul.f32 0.6931472, %v1388_v41  ;;  %1397 = vlog2.f32 %v910_v19 }
 0x228   :  { %v868_v7 = vpop.xlane.xlu0 %867 }
 0x229   :  { %v1014_v61 = vsub.f32 %v1804_v60, %v951_v48  ;;  %v865_v23 = vpop.xlane.xlu1 %864 }
 0x22a   :  { %1399 = vlog2.f32 %v865_v23  ;;  %v1390_v63 = vpop.eup %1389 }
 0x22b   :  { %1046 = vst.msk [vmem:[%s2125_s2] sm:$0xff] %vm16_vm0, %v1014_v61  ;;  %1401 = vlog2.f32 %v868_v7  ;;  %v983_v47 = vmul.f32 0.6931472, %v1390_v63 }
 0x22c   :  { %v916_v31 = vpop.xlane.xlu0 %915 }
 0x22d   :  { %v913_v49 = vpop.xlane.xlu1 %912  ;;  %v1030_v33 = vsub.f32 %v1808_v2, %v983_v47 }
 0x22e   :  { %1403 = vlog2.f32 %v913_v49 }
 0x22f   :  { %v1392_v35 = vpop.eup %1391  ;;  %1405 = vlog2.f32 %v916_v31  ;;  %1062 = vst.msk [vmem:[%s2125_s2 + $0x80] sm:$0xff] %vm16_vm0, %v1030_v33 }
 0x230   :  { %v1394_v4 = vpop.eup %1393  ;;  %v953_v60 = vmul.f32 0.6931472, %v1392_v35  ;;  %v874_v17 = vpop.xlane.xlu0 %873 }
 0x231   :  { %v955_v38 = vmul.f32 0.6931472, %v1394_v4  ;;  %v871_v57 = vpop.xlane.xlu1 %870 }
 0x232   :  { %v1015_v50 = vsub.f32 %v1818_v21, %v953_v60  ;;  %1407 = vlog2.f32 %v871_v57 }
 0x233   :  { %v1396_v51 = vpop.eup %1395  ;;  %v1016_v54 = vsub.f32 %v1815_v10, %v955_v38  ;;  %1409 = vlog2.f32 %v874_v17 }
 0x234   :  { %v1398_v2 = vpop.eup %1397  ;;  %1047 = vst.msk [vmem:[%s2125_s2 + $0x8] sm:$0xff] %vm16_vm0, %v1015_v50  ;;  %v985_v13 = vmul.f32 0.6931472, %v1396_v51  ;;  %v922_v21 = vpop.xlane.xlu0 %921 }
 0x235   :  { %1048 = vst.msk [vmem:[%s2125_s2 + $0x10] sm:$0xff] %vm16_vm0, %v1016_v54  ;;  %v987_v58 = vmul.f32 0.6931472, %v1398_v2  ;;  %v919_v32 = vpop.xlane.xlu1 %918 }
 0x236   :  { %v1031_v62 = vsub.f32 %v1812_v6, %v985_v13  ;;  %1411 = vlog2.f32 %v919_v32 }
 0x237   :  { %v1400_v10 = vpop.eup %1399  ;;  %v1032_v39 = vsub.f32 %v1827_v20, %v987_v58  ;;  %1413 = vlog2.f32 %v922_v21 }
 0x238   :  { %v1402_v1 = vpop.eup %1401  ;;  %1063 = vst.msk [vmem:[%s2125_s2 + $0x88] sm:$0xff] %vm16_vm0, %v1031_v62  ;;  %v957_v3 = vmul.f32 0.6931472, %v1400_v10  ;;  %v880_v6 = vpop.xlane.xlu0 %879 }
 0x239   :  { %1064 = vst.msk [vmem:[%s2125_s2 + $0x90] sm:$0xff] %vm16_vm0, %v1032_v39  ;;  %v959_v8 = vmul.f32 0.6931472, %v1402_v1  ;;  %v877_v36 = vpop.xlane.xlu1 %876 }
 0x23a   :  { %v1017_v11 = vsub.f32 %v1824_v34, %v957_v3  ;;  %1415 = vlog2.f32 %v877_v36 }
 0x23b   :  { %v1404_v20 = vpop.eup %1403  ;;  %v1018_v40 = vsub.f32 %v1835_v28, %v959_v8  ;;  %1417 = vlog2.f32 %v880_v6 }
 0x23c   :  { %v1406_v27 = vpop.eup %1405  ;;  %1049 = vst.msk [vmem:[%s2125_s2 + $0x18] sm:$0xff] %vm16_vm0, %v1017_v11  ;;  %v989_v43 = vmul.f32 0.6931472, %v1404_v20  ;;  %v928_v34 = vpop.xlane.xlu0 %927 }
 0x23d   :  { %1050 = vst.msk [vmem:[%s2125_s2 + $0x20] sm:$0xff] %vm16_vm0, %v1018_v40  ;;  %v991_v19 = vmul.f32 0.6931472, %v1406_v27  ;;  %v925_v41 = vpop.xlane.xlu1 %924 }
 0x23e   :  { %v1033_v48 = vsub.f32 %v1832_v24, %v989_v43  ;;  %1419 = vlog2.f32 %v925_v41 }
 0x23f   :  { %v1408_v28 = vpop.eup %1407  ;;  %v1034_v61 = vsub.f32 %v1844_v5, %v991_v19  ;;  %1421 = vlog2.f32 %v928_v34 }
 0x240   :  { %v1410_v23 = vpop.eup %1409  ;;  %1065 = vst.msk [vmem:[%s2125_s2 + $0x98] sm:$0xff] %vm16_vm0, %v1033_v48  ;;  %v961_v7 = vmul.f32 0.6931472, %v1408_v28  ;;  %v886_v24 = vpop.xlane.xlu0 %885 }
 0x241   :  { %1066 = vst.msk [vmem:[%s2125_s2 + $0xa0] sm:$0xff] %vm16_vm0, %v1034_v61  ;;  %v963_v63 = vmul.f32 0.6931472, %v1410_v23  ;;  %v883_v47 = vpop.xlane.xlu1 %882 }
 0x242   :  { %v1019_v49 = vsub.f32 %v1841_v37, %v961_v7  ;;  %1423 = vlog2.f32 %v883_v47 }
 0x243   :  { %v1412_v5 = vpop.eup %1411  ;;  %v1020_v31 = vsub.f32 %v1853_v29, %v963_v63  ;;  %1425 = vlog2.f32 %v886_v24 }
 0x244   :  { %v1414_v33 = vpop.eup %1413  ;;  %1051 = vst.msk [vmem:[%s2125_s2 + $0x28] sm:$0xff] %vm16_vm0, %v1019_v49  ;;  %v993_v35 = vmul.f32 0.6931472, %v1412_v5  ;;  %v934_v37 = vpop.xlane.xlu0 %933 }
 0x245   :  { %1052 = vst.msk [vmem:[%s2125_s2 + $0x30] sm:$0xff] %vm16_vm0, %v1020_v31  ;;  %v995_v4 = vmul.f32 0.6931472, %v1414_v33  ;;  %v931_v60 = vpop.xlane.xlu1 %930 }
 0x246   :  { %v1035_v38 = vsub.f32 %v1850_v56, %v993_v35  ;;  %1427 = vlog2.f32 %v931_v60 }
 0x247   :  { %v1416_v29 = vpop.eup %1415  ;;  %v1036_v57 = vsub.f32 %v1863_v44, %v995_v4  ;;  %1429 = vlog2.f32 %v934_v37 }
 0x248   :  { %v1418_v17 = vpop.eup %1417  ;;  %1067 = vst.msk [vmem:[%s2125_s2 + $0xa8] sm:$0xff] %vm16_vm0, %v1035_v38  ;;  %v965_v50 = vmul.f32 0.6931472, %v1416_v29  ;;  %v892_v56 = vpop.xlane.xlu0 %891 }
 0x249   :  { %1068 = vst.msk [vmem:[%s2125_s2 + $0xb0] sm:$0xff] %vm16_vm0, %v1036_v57  ;;  %v967_v51 = vmul.f32 0.6931472, %v1418_v17  ;;  %v889_v54 = vpop.xlane.xlu1 %888 }
 0x24a   :  { %v1021_v2 = vsub.f32 %v1860_v9, %v965_v50  ;;  %1431 = vlog2.f32 %v889_v54 }
 0x24b   :  { %v1420_v44 = vpop.eup %1419  ;;  %v1022_v13 = vsub.f32 %v1873_v45, %v967_v51  ;;  %1433 = vlog2.f32 %v892_v56 }
 0x24c   :  { %v1422_v58 = vpop.eup %1421  ;;  %1053 = vst.msk [vmem:[%s2125_s2 + $0x38] sm:$0xff] %vm16_vm0, %v1021_v2  ;;  %v997_v32 = vmul.f32 0.6931472, %v1420_v44  ;;  %v940_v9 = vpop.xlane.xlu0 %939 }
 0x24d   :  { %1054 = vst.msk [vmem:[%s2125_s2 + $0x40] sm:$0xff] %vm16_vm0, %v1022_v13  ;;  %v999_v21 = vmul.f32 0.6931472, %v1422_v58  ;;  %v937_v62 = vpop.xlane.xlu1 %936 }
 0x24e   :  { %v1037_v10 = vsub.f32 %v1870_v22, %v997_v32  ;;  %1435 = vlog2.f32 %v937_v62 }
 0x24f   :  { %v1424_v45 = vpop.eup %1423  ;;  %v1038_v39 = vsub.f32 %v1883_v14, %v999_v21  ;;  %1437 = vlog2.f32 %v940_v9 }
 0x250   :  { %v1426_v1 = vpop.eup %1425  ;;  %1069 = vst.msk [vmem:[%s2125_s2 + $0xb8] sm:$0xff] %vm16_vm0, %v1037_v10  ;;  %v969_v3 = vmul.f32 0.6931472, %v1424_v45  ;;  %v898_v22 = vpop.xlane.xlu0 %897 }
 0x251   :  { %1070 = vst.msk [vmem:[%s2125_s2 + $0xc0] sm:$0xff] %vm16_vm0, %v1038_v39  ;;  %v971_v8 = vmul.f32 0.6931472, %v1426_v1  ;;  %v895_v36 = vpop.xlane.xlu1 %894 }
 0x252   :  { %v1023_v6 = vsub.f32 %v1880_v12, %v969_v3  ;;  %1439 = vlog2.f32 %v895_v36 }
 0x253   :  { %v1428_v14 = vpop.eup %1427  ;;  %v1024_v11 = vsub.f32 %v1893_v15, %v971_v8  ;;  %1441 = vlog2.f32 %v898_v22 }
 0x254   :  { %v1430_v20 = vpop.eup %1429  ;;  %1055 = vst.msk [vmem:[%s2125_s2 + $0x48] sm:$0xff] %vm16_vm0, %v1023_v6  ;;  %v1001_v40 = vmul.f32 0.6931472, %v1428_v14  ;;  %v946_v12 = vpop.xlane.xlu0 %945 }
 0x255   :  { %1056 = vst.msk [vmem:[%s2125_s2 + $0x50] sm:$0xff] %vm16_vm0, %v1024_v11  ;;  %v1003_v27 = vmul.f32 0.6931472, %v1430_v20  ;;  %v943_v43 = vpop.xlane.xlu1 %942 }
 0x256   :  { %v1039_v19 = vsub.f32 %v1890_v59, %v1001_v40  ;;  %1443 = vlog2.f32 %v943_v43 }
 0x257   :  { %v1432_v15 = vpop.eup %1431  ;;  %v1040_v41 = vsub.f32 %v1903_v52, %v1003_v27  ;;  %1445 = vlog2.f32 %v946_v12 }
 0x258   :  { %v1434_v34 = vpop.eup %1433  ;;  %1071 = vst.msk [vmem:[%s2125_s2 + $0xc8] sm:$0xff] %vm16_vm0, %v1039_v19  ;;  %v973_v48 = vmul.f32 0.6931472, %v1432_v15 }
 0x259   :  { %1072 = vst.msk [vmem:[%s2125_s2 + $0xd0] sm:$0xff] %vm16_vm0, %v1040_v41  ;;  %v975_v28 = vmul.f32 0.6931472, %v1434_v34  ;;  %v901_v61 = vpop.xlane.xlu1 %900 }
 0x25a   :  { %v1025_v59 = vsub.f32 %v1900_v16, %v973_v48  ;;  %1447 = vlog2.f32 %v901_v61 }
 0x25b   :  { %v1436_v23 = vpop.eup %1435  ;;  %v1026_v52 = vsub.f32 %v1913_v53, %v975_v28 }
 0x25c   :  { %v1438_v7 = vpop.eup %1437  ;;  %1057 = vst.msk [vmem:[%s2125_s2 + $0x58] sm:$0xff] %vm16_vm0, %v1025_v59  ;;  %v1005_v63 = vmul.f32 0.6931472, %v1436_v23 }
 0x25d   :  { %1058 = vst.msk [vmem:[%s2125_s2 + $0x60] sm:$0xff] %vm16_vm0, %v1026_v52  ;;  %v1007_v47 = vmul.f32 0.6931472, %v1438_v7  ;;  %v949_v24 = vpop.xlane.xlu1 %948 }
 0x25e   :  { %v1041_v16 = vsub.f32 %v1910_v30, %v1005_v63  ;;  %1449 = vlog2.f32 %v949_v24 }
 0x25f   :  { %v1440_v49 = vpop.eup %1439  ;;  %v1042_v53 = vsub.f32 %v1923_v25, %v1007_v47 }
 0x260   :  { %v1442_v5 = vpop.eup %1441  ;;  %1073 = vst.msk [vmem:[%s2125_s2 + $0xd8] sm:$0xff] %vm16_vm0, %v1041_v16  ;;  %v977_v31 = vmul.f32 0.6931472, %v1440_v49 }
 0x261   :  { %1074 = vst.msk [vmem:[%s2125_s2 + $0xe0] sm:$0xff] %vm16_vm0, %v1042_v53  ;;  %v979_v33 = vmul.f32 0.6931472, %v1442_v5 }
 0x262   :  { %v1027_v35 = vsub.f32 %v1920_v42, %v977_v31 }
 0x263   :  { %v1444_v30 = vpop.eup %1443  ;;  %v1028_v4 = vsub.f32 %v1933_v26, %v979_v33 }
 0x264   :  { %v1446_v60 = vpop.eup %1445  ;;  %1059 = vst.msk [vmem:[%s2125_s2 + $0x68] sm:$0xff] %vm16_vm0, %v1027_v35  ;;  %v1009_v25 = vmul.f32 0.6931472, %v1444_v30 }
 0x265   :  { %1060 = vst.msk [vmem:[%s2125_s2 + $0x70] sm:$0xff] %vm16_vm0, %v1028_v4  ;;  %v1011_v37 = vmul.f32 0.6931472, %v1446_v60 }
 0x266   :  { %v1043_v38 = vsub.f32 %v1930_v0, %v1009_v25 }
 0x267   :  { %v1448_v29 = vpop.eup %1447  ;;  %v1044_v42 = vsub.f32 %v1943_v46, %v1011_v37 }
 0x268   :  { %1075 = vst.msk [vmem:[%s2125_s2 + $0xe8] sm:$0xff] %vm16_vm0, %v1043_v38  ;;  %v981_v26 = vmul.f32 0.6931472, %v1448_v29 }
 0x269   :  { %1076 = vst.msk [vmem:[%s2125_s2 + $0xf0] sm:$0xff] %vm16_vm0, %v1044_v42 }
 0x26a   :  { %v1029_v57 = vsub.f32 %v1940_v18, %v981_v26 }
 0x26b   :  { %v1450_v17 = vpop.eup %1449 }
 0x26c   :  { %1061 = vst.msk [vmem:[%s2125_s2 + $0x78] sm:$0xff] %vm16_vm0, %v1029_v57  ;;  %v1013_v0 = vmul.f32 0.6931472, %v1450_v17 }
 0x26e   :  { %v1045_v46 = vsub.f32 %v1950_v55, %v1013_v0 }
 0x270   :  { %1077 = vst.msk [vmem:[%s2125_s2 + $0xf8] sm:$0xff] %vm16_vm0, %v1045_v46 }

</bundles_post_ra>
